<compile_context>
chip_gen: v6e
topology: v6e:2x2x1
jax: 0.10.0
libtpu: 0.0.40
codegen_flags: <defaults>
</compile_context>

<pallas_src>
import functools
import math

import jax
import jax.numpy as jnp
from jax.experimental import pallas as pl
from jax.experimental.pallas import tpu as pltpu

# ----------------------------- model hyper-params ------------------------------------
VOCAB_SIZE = 100
HIDDEN = 32
ENTITY_VOCAB = 50
ENTITY_DIM = 16
NUM_LABELS = 5
NHEAD = 4                  # nn.TransformerEncoderLayer(nhead=4)
FFN = 2048                 # PyTorch default dim_feedforward
NUM_LAYERS = 2
LN_EPS = 1e-5
CLS_PAD = 128              # lane-dense classifier output width (sliced to NUM_LABELS)
B, S = 2, 8


# ----------------------------- fused kernels ------------------------------------------
def _proj_kernel(tok_ref, ent_ref, wt_ref, we_ref, b_ref, o_ref):
    # concat(tok, ent) @ W.T + b  ==  tok @ W_tok + ent @ W_ent + b  (no 48-wide concat)
    o_ref[...] = (
        jnp.dot(tok_ref[...], wt_ref[...], preferred_element_type=jnp.float32)
        + jnp.dot(ent_ref[...], we_ref[...], preferred_element_type=jnp.float32)
        + b_ref[...]
    )


def _attn_ln_kernel(x_ref, in_w_ref, in_b_ref, out_w_ref, out_b_ref,
                    g_ref, bb_ref, o_ref, *, nhead, eps):
    x = x_ref[...]                                           # (S, H) f32, one batch element
    Ss, H = x.shape
    Dh = H // nhead
    scale = 1.0 / math.sqrt(Dh)

    # fused QKV projection
    qkv = jnp.dot(x, in_w_ref[...], preferred_element_type=jnp.float32) + in_b_ref[...]
    q = qkv[:, 0 * H:1 * H]
    k = qkv[:, 1 * H:2 * H]
    v = qkv[:, 2 * H:3 * H]

    out_w = out_w_ref[...]                                   # (H, H)
    attn_out = jnp.zeros((Ss, H), jnp.float32)
    for h in range(nhead):                                   # unrolled, all heads in one step
        lo, hi = h * Dh, (h + 1) * Dh
        qh, kh, vh = q[:, lo:hi], k[:, lo:hi], v[:, lo:hi]
        # Q @ K^T via (last, last) contraction -- no in-kernel transpose.
        s = jax.lax.dot_general(qh, kh, (((1,), (1,)), ((), ())),
                                preferred_element_type=jnp.float32) * scale
        m = jnp.max(s, axis=-1, keepdims=True)
        e = jnp.exp(s - m)
        p = e * pl.reciprocal(jnp.sum(e, axis=-1, keepdims=True), approx=True)
        ctx_h = jnp.dot(p, vh, preferred_element_type=jnp.float32)          # (S, Dh)
        # fold output projection in as a per-head partial matmul (avoids lane concat)
        attn_out = attn_out + jnp.dot(ctx_h, out_w[lo:hi, :],
                                      preferred_element_type=jnp.float32)
    attn_out = attn_out + out_b_ref[...]

    # residual add + LayerNorm epilogue (LN1)
    y = x + attn_out
    mean = jnp.mean(y, axis=-1, keepdims=True)
    var = jnp.mean((y - mean) * (y - mean), axis=-1, keepdims=True)
    yn = (y - mean) * jax.lax.rsqrt(var + eps)
    o_ref[...] = yn * g_ref[...] + bb_ref[...]


def _ffn_ln_kernel(x_ref, w1_ref, b1_ref, w2_ref, b2_ref, g_ref, bb_ref, o_ref, *, eps):
    x = x_ref[...]                                           # (S, H) f32
    # bf16 matmul operands, f32 accumulation; elementwise stays f32 (v5e-safe)
    h = jnp.dot(x.astype(jnp.bfloat16), w1_ref[...],
                preferred_element_type=jnp.float32) + b1_ref[...]
    h = jnp.maximum(h, 0.0)                                  # ReLU in f32
    y = jnp.dot(h.astype(jnp.bfloat16), w2_ref[...],
                preferred_element_type=jnp.float32) + b2_ref[...]

    # residual add + LayerNorm epilogue (LN2)
    z = x + y
    mean = jnp.mean(z, axis=-1, keepdims=True)
    var = jnp.mean((z - mean) * (z - mean), axis=-1, keepdims=True)
    zn = (z - mean) * jax.lax.rsqrt(var + eps)
    o_ref[...] = zn * g_ref[...] + bb_ref[...]


def _cls_kernel(x_ref, w_ref, b_ref, o_ref):
    # lane-dense (128-wide) output; wrapper slices to NUM_LABELS
    o_ref[...] = jnp.dot(x_ref[...], w_ref[...],
                         preferred_element_type=jnp.float32) + b_ref[...]


# ----------------------------- pallas_call wrappers ------------------------------------
def proj_linear(tok, ent, w_tok_t, w_ent_t, b):
    M = tok.shape[0]
    return pl.pallas_call(
        _proj_kernel,
        grid=(1,),
        out_shape=jax.ShapeDtypeStruct((M, HIDDEN), jnp.float32),
        in_specs=[
            pl.BlockSpec((M, HIDDEN), lambda i: (0, 0)),
            pl.BlockSpec((M, ENTITY_DIM), lambda i: (0, 0)),
            pl.BlockSpec((HIDDEN, HIDDEN), lambda i: (0, 0)),
            pl.BlockSpec((ENTITY_DIM, HIDDEN), lambda i: (0, 0)),
            pl.BlockSpec((1, HIDDEN), lambda i: (0, 0)),
        ],
        out_specs=pl.BlockSpec((M, HIDDEN), lambda i: (0, 0)),
    )(tok, ent, w_tok_t, w_ent_t, b)


def attention_block(x2, p, Bb, Ss):
    H = HIDDEN
    return pl.pallas_call(
        functools.partial(_attn_ln_kernel, nhead=NHEAD, eps=LN_EPS),
        grid=(Bb,),                              # one step per batch element
        out_shape=jax.ShapeDtypeStruct((Bb * Ss, H), jnp.float32),
        in_specs=[
            pl.BlockSpec((Ss, H), lambda i: (i, 0)),
            pl.BlockSpec((H, 3 * H), lambda i: (0, 0)),
            pl.BlockSpec((1, 3 * H), lambda i: (0, 0)),
            pl.BlockSpec((H, H), lambda i: (0, 0)),
            pl.BlockSpec((1, H), lambda i: (0, 0)),
            pl.BlockSpec((1, H), lambda i: (0, 0)),
            pl.BlockSpec((1, H), lambda i: (0, 0)),
        ],
        out_specs=pl.BlockSpec((Ss, H), lambda i: (i, 0)),
        compiler_params=pltpu.CompilerParams(dimension_semantics=("parallel",)),
    )(x2, p["in_w_t"], p["in_b"], p["out_w_t"], p["out_b"], p["ln1_g"], p["ln1_b"])


def ffn_block(x2, p, Bb, Ss):
    H = HIDDEN
    return pl.pallas_call(
        functools.partial(_ffn_ln_kernel, eps=LN_EPS),
        grid=(Bb,),
        out_shape=jax.ShapeDtypeStruct((Bb * Ss, H), jnp.float32),
        in_specs=[
            pl.BlockSpec((Ss, H), lambda i: (i, 0)),
            pl.BlockSpec((H, FFN), lambda i: (0, 0)),
            pl.BlockSpec((1, FFN), lambda i: (0, 0)),
            pl.BlockSpec((FFN, H), lambda i: (0, 0)),
            pl.BlockSpec((1, H), lambda i: (0, 0)),
            pl.BlockSpec((1, H), lambda i: (0, 0)),
            pl.BlockSpec((1, H), lambda i: (0, 0)),
        ],
        out_specs=pl.BlockSpec((Ss, H), lambda i: (i, 0)),
        compiler_params=pltpu.CompilerParams(dimension_semantics=("parallel",)),
    )(x2, p["ff1_w_t"], p["ff1_b"], p["ff2_w_t"], p["ff2_b"], p["ln2_g"], p["ln2_b"])


def classifier(x2, w_pad, b_pad):
    M = x2.shape[0]
    return pl.pallas_call(
        _cls_kernel,
        grid=(1,),
        out_shape=jax.ShapeDtypeStruct((M, CLS_PAD), jnp.float32),
        in_specs=[
            pl.BlockSpec((M, HIDDEN), lambda i: (0, 0)),
            pl.BlockSpec((HIDDEN, CLS_PAD), lambda i: (0, 0)),
            pl.BlockSpec((1, CLS_PAD), lambda i: (0, 0)),
        ],
        out_specs=pl.BlockSpec((M, CLS_PAD), lambda i: (0, 0)),
    )(x2, w_pad, b_pad)


# ----------------------------- forward pass --------------------------------------------
def koios_forward(params, input_ids, entity_ids):
    Bb, Ss = input_ids.shape
    # TODO(synk): embedding gathers stay in plain JAX (dynamic row gather; not worth a kernel here)
    tok = params["token_emb"][input_ids].reshape(Bb * Ss, HIDDEN)
    ent = params["entity_emb"][entity_ids].reshape(Bb * Ss, ENTITY_DIM)

    x = proj_linear(tok, ent, params["proj_w_tok_t"], params["proj_w_ent_t"],
                    params["proj_b"])                        # (B*S, H)
    for lp in params["layers"]:
        x = attention_block(x, lp, Bb, Ss)                   # fused MHA + add + LN1
        x = ffn_block(x, lp, Bb, Ss)                         # fused FFN + add + LN2

    logits = classifier(x, params["cls_w_t_pad"], params["cls_b_pad"])   # (B*S, 128)
    return logits[:, :NUM_LABELS].reshape(Bb, Ss, NUM_LABELS)


# ----------------------------- deterministic parameter init ---------------------------
def init_params(key):
    keys = jax.random.split(key, 64)
    it = iter(keys)

    def nrm(shape, dtype=jnp.float32, scale=0.02):
        return (scale * jax.random.normal(next(it), shape)).astype(dtype)

    cls_w = nrm((HIDDEN, NUM_LABELS))
    cls_b = nrm((1, NUM_LABELS))
    params = {
        "token_emb": nrm((VOCAB_SIZE, HIDDEN)),
        "entity_emb": nrm((ENTITY_VOCAB, ENTITY_DIM)),
        # proj weight split by input-feature group (== concat(tok, ent) @ W.T)
        "proj_w_tok_t": nrm((HIDDEN, HIDDEN)),
        "proj_w_ent_t": nrm((ENTITY_DIM, HIDDEN)),
        "proj_b": nrm((1, HIDDEN)),
        # lane-dense classifier weights (zero-padded to 128 output lanes)
        "cls_w_t_pad": jnp.zeros((HIDDEN, CLS_PAD), jnp.float32).at[:, :NUM_LABELS].set(cls_w),
        "cls_b_pad": jnp.zeros((1, CLS_PAD), jnp.float32).at[:, :NUM_LABELS].set(cls_b),
        "layers": [],
    }
    for _ in range(NUM_LAYERS):
        params["layers"].append({
            "in_w_t": nrm((HIDDEN, 3 * HIDDEN)),
            "in_b": nrm((1, 3 * HIDDEN)),
            "out_w_t": nrm((HIDDEN, HIDDEN)),
            "out_b": nrm((1, HIDDEN)),
            "ln1_g": jnp.ones((1, HIDDEN), jnp.float32),
            "ln1_b": jnp.zeros((1, HIDDEN), jnp.float32),
            # FFN weights in bf16 (MXU operands); accumulation stays f32 in-kernel
            "ff1_w_t": nrm((HIDDEN, FFN), jnp.bfloat16),
            "ff1_b": nrm((1, FFN)),
            "ff2_w_t": nrm((FFN, HIDDEN), jnp.bfloat16),
            "ff2_b": nrm((1, HIDDEN)),
            "ln2_g": jnp.ones((1, HIDDEN), jnp.float32),
            "ln2_b": jnp.zeros((1, HIDDEN), jnp.float32),
        })
    return params


# ----------------------------- main ----------------------------------------------------
if __name__ == "__main__":
    root = jax.random.PRNGKey(0)
    k_param, k_tok, k_ent = jax.random.split(root, 3)

    params = init_params(k_param)
    input_ids = jax.random.randint(k_tok, (B, S), 0, VOCAB_SIZE, dtype=jnp.int32)
    entity_ids = jax.random.randint(k_ent, (B, S), 0, ENTITY_VOCAB, dtype=jnp.int32)

    fwd = jax.jit(koios_forward)
    logits = jax.block_until_ready(fwd(params, input_ids, entity_ids))

    assert logits.shape == (B, S, NUM_LABELS)
    assert bool(jnp.all(jnp.isfinite(logits)))
    print("KERNEL_OK")
</pallas_src>

<mosaic_0001>
module attributes {stable_mosaic.version = 11 : i64} {
  func.func @_proj_kernel(%arg0: i32, %arg1: memref<16x32xf32, #tpu.memory_space<vmem>>, %arg2: memref<16x16xf32, #tpu.memory_space<vmem>>, %arg3: memref<32x32xf32, #tpu.memory_space<vmem>>, %arg4: memref<16x32xf32, #tpu.memory_space<vmem>>, %arg5: memref<1x32xf32, #tpu.memory_space<vmem>>, %arg6: memref<16x32xf32, #tpu.memory_space<vmem>>) attributes {dimension_semantics = [#tpu.dimension_semantics<arbitrary>], iteration_bounds = array<i64: 1>, scalar_prefetch = 0 : i64, scratch_operands = 0 : i64, tpu.core_type = #tpu.core_type<tc>, window_params = [{pipeline_mode = #tpu.pipeline_mode<synchronous>, transform_indices = @transform_0, window_bounds = array<i64: 16, 32>}, {pipeline_mode = #tpu.pipeline_mode<synchronous>, transform_indices = @transform_1, window_bounds = array<i64: 16, 16>}, {pipeline_mode = #tpu.pipeline_mode<synchronous>, transform_indices = @transform_2, window_bounds = array<i64: 32, 32>}, {pipeline_mode = #tpu.pipeline_mode<synchronous>, transform_indices = @transform_3, window_bounds = array<i64: 16, 32>}, {pipeline_mode = #tpu.pipeline_mode<synchronous>, transform_indices = @transform_4, window_bounds = array<i64: 1, 32>}, {pipeline_mode = #tpu.pipeline_mode<synchronous>, transform_indices = @transform_5, window_bounds = array<i64: 16, 32>}]} {
    %c0 = arith.constant 0 : index
    %c0_0 = arith.constant 0 : index
    %0 = vector.load %arg1[%c0, %c0_0] : memref<16x32xf32, #tpu.memory_space<vmem>>, vector<16x32xf32>
    %c0_1 = arith.constant 0 : index
    %c0_2 = arith.constant 0 : index
    %1 = vector.load %arg3[%c0_1, %c0_2] : memref<32x32xf32, #tpu.memory_space<vmem>>, vector<32x32xf32>
    %cst = arith.constant dense<0.000000e+00> : vector<16x32xf32>
    %2 = tpu.matmul %0, %1, %cst {dimension_numbers = #tpu.dot_dimension_numbers<[1], [0], [0], [1], [0, 0, 1, 1], [], []>} : vector<16x32xf32>, vector<32x32xf32>, vector<16x32xf32> -> vector<16x32xf32>
    %c0_3 = arith.constant 0 : index
    %c0_4 = arith.constant 0 : index
    %3 = vector.load %arg2[%c0_3, %c0_4] : memref<16x16xf32, #tpu.memory_space<vmem>>, vector<16x16xf32>
    %c0_5 = arith.constant 0 : index
    %c0_6 = arith.constant 0 : index
    %4 = vector.load %arg4[%c0_5, %c0_6] : memref<16x32xf32, #tpu.memory_space<vmem>>, vector<16x32xf32>
    %cst_7 = arith.constant dense<0.000000e+00> : vector<16x32xf32>
    %5 = tpu.matmul %3, %4, %cst_7 {dimension_numbers = #tpu.dot_dimension_numbers<[1], [0], [0], [1], [0, 0, 1, 1], [], []>} : vector<16x16xf32>, vector<16x32xf32>, vector<16x32xf32> -> vector<16x32xf32>
    %6 = arith.addf %2, %5 : vector<16x32xf32>
    %c0_8 = arith.constant 0 : index
    %c0_9 = arith.constant 0 : index
    %7 = vector.load %arg5[%c0_8, %c0_9] : memref<1x32xf32, #tpu.memory_space<vmem>>, vector<1x32xf32>
    %8 = vector.broadcast %7 : vector<1x32xf32> to vector<16x32xf32>
    %9 = arith.addf %6, %8 : vector<16x32xf32>
    %c0_10 = arith.constant 0 : index
    %c0_11 = arith.constant 0 : index
    %10 = vector.load %arg6[%c0_10, %c0_11] : memref<16x32xf32, #tpu.memory_space<vmem>>, vector<16x32xf32>
    tpu.vector_store %arg6[%c0_10, %c0_11], %9 {strides = array<i32>} : memref<16x32xf32, #tpu.memory_space<vmem>>, vector<16x32xf32>,
    return
  }
  func.func @transform_0(%arg0: i32) -> (i32, i32) {
    %c0_i32 = arith.constant 0 : i32
    %c0_i32_0 = arith.constant 0 : i32
    %c0_i32_1 = arith.constant 0 : i32
    return %c0_i32, %c0_i32_0 : i32, i32
  }
  func.func @transform_1(%arg0: i32) -> (i32, i32) {
    %c0_i32 = arith.constant 0 : i32
    %c0_i32_0 = arith.constant 0 : i32
    %c0_i32_1 = arith.constant 0 : i32
    return %c0_i32, %c0_i32_0 : i32, i32
  }
  func.func @transform_2(%arg0: i32) -> (i32, i32) {
    %c0_i32 = arith.constant 0 : i32
    %c0_i32_0 = arith.constant 0 : i32
    %c0_i32_1 = arith.constant 0 : i32
    return %c0_i32, %c0_i32_0 : i32, i32
  }
  func.func @transform_3(%arg0: i32) -> (i32, i32) {
    %c0_i32 = arith.constant 0 : i32
    %c0_i32_0 = arith.constant 0 : i32
    %c0_i32_1 = arith.constant 0 : i32
    return %c0_i32, %c0_i32_0 : i32, i32
  }
  func.func @transform_4(%arg0: i32) -> (i32, i32) {
    %c0_i32 = arith.constant 0 : i32
    %c0_i32_0 = arith.constant 0 : i32
    %c0_i32_1 = arith.constant 0 : i32
    return %c0_i32, %c0_i32_0 : i32, i32
  }
  func.func @transform_5(%arg0: i32) -> (i32, i32) {
    %c0_i32 = arith.constant 0 : i32
    %c0_i32_0 = arith.constant 0 : i32
    %c0_i32_1 = arith.constant 0 : i32
    return %c0_i32, %c0_i32_0 : i32, i32
  }
}

module attributes {stable_mosaic.version = 11 : i64} {
  func.func @_attn_ln_kernel(%arg0: i32, %arg1: memref<8x32xf32, #tpu.memory_space<vmem>>, %arg2: memref<32x96xf32, #tpu.memory_space<vmem>>, %arg3: memref<1x96xf32, #tpu.memory_space<vmem>>, %arg4: memref<32x32xf32, #tpu.memory_space<vmem>>, %arg5: memref<1x32xf32, #tpu.memory_space<vmem>>, %arg6: memref<1x32xf32, #tpu.memory_space<vmem>>, %arg7: memref<1x32xf32, #tpu.memory_space<vmem>>, %arg8: memref<8x32xf32, #tpu.memory_space<vmem>>) attributes {dimension_semantics = [#tpu.dimension_semantics<parallel>], iteration_bounds = array<i64: 2>, scalar_prefetch = 0 : i64, scratch_operands = 0 : i64, tpu.core_type = #tpu.core_type<tc>, window_params = [{transform_indices = @transform_0, window_bounds = array<i64: 8, 32>}, {pipeline_mode = #tpu.pipeline_mode<synchronous>, transform_indices = @transform_1, window_bounds = array<i64: 32, 96>}, {pipeline_mode = #tpu.pipeline_mode<synchronous>, transform_indices = @transform_2, window_bounds = array<i64: 1, 96>}, {pipeline_mode = #tpu.pipeline_mode<synchronous>, transform_indices = @transform_3, window_bounds = array<i64: 32, 32>}, {pipeline_mode = #tpu.pipeline_mode<synchronous>, transform_indices = @transform_4, window_bounds = array<i64: 1, 32>}, {pipeline_mode = #tpu.pipeline_mode<synchronous>, transform_indices = @transform_5, window_bounds = array<i64: 1, 32>}, {pipeline_mode = #tpu.pipeline_mode<synchronous>, transform_indices = @transform_6, window_bounds = array<i64: 1, 32>}, {transform_indices = @transform_7, window_bounds = array<i64: 8, 32>}]} {
    %c0 = arith.constant 0 : index
    %c0_0 = arith.constant 0 : index
    %0 = vector.load %arg1[%c0, %c0_0] : memref<8x32xf32, #tpu.memory_space<vmem>>, vector<8x32xf32>
    %c0_1 = arith.constant 0 : index
    %c0_2 = arith.constant 0 : index
    %1 = vector.load %arg2[%c0_1, %c0_2] : memref<32x96xf32, #tpu.memory_space<vmem>>, vector<32x96xf32>
    %cst = arith.constant dense<0.000000e+00> : vector<8x96xf32>
    %2 = tpu.matmul %0, %1, %cst {dimension_numbers = #tpu.dot_dimension_numbers<[1], [0], [0], [1], [0, 0, 1, 1], [], []>} : vector<8x32xf32>, vector<32x96xf32>, vector<8x96xf32> -> vector<8x96xf32>
    %c0_3 = arith.constant 0 : index
    %c0_4 = arith.constant 0 : index
    %3 = vector.load %arg3[%c0_3, %c0_4] : memref<1x96xf32, #tpu.memory_space<vmem>>, vector<1x96xf32>
    %4 = vector.broadcast %3 : vector<1x96xf32> to vector<8x96xf32>
    %5 = arith.addf %2, %4 : vector<8x96xf32>
    %6 = vector.extract_strided_slice %5 {offsets = [0, 0], sizes = [8, 32], strides = [1, 1]} : vector<8x96xf32> to vector<8x32xf32>
    %7 = vector.extract_strided_slice %5 {offsets = [0, 32], sizes = [8, 32], strides = [1, 1]} : vector<8x96xf32> to vector<8x32xf32>
    %8 = vector.extract_strided_slice %5 {offsets = [0, 64], sizes = [8, 32], strides = [1, 1]} : vector<8x96xf32> to vector<8x32xf32>
    %c0_5 = arith.constant 0 : index
    %c0_6 = arith.constant 0 : index
    %9 = vector.load %arg4[%c0_5, %c0_6] : memref<32x32xf32, #tpu.memory_space<vmem>>, vector<32x32xf32>
    %cst_7 = arith.constant 0.000000e+00 : f32
    %10 = vector.broadcast %cst_7 : f32 to vector<8x32xf32>
    %11 = vector.extract_strided_slice %6 {offsets = [0, 0], sizes = [8, 8], strides = [1, 1]} : vector<8x32xf32> to vector<8x8xf32>
    %12 = vector.extract_strided_slice %7 {offsets = [0, 0], sizes = [8, 8], strides = [1, 1]} : vector<8x32xf32> to vector<8x8xf32>
    %13 = vector.extract_strided_slice %8 {offsets = [0, 0], sizes = [8, 8], strides = [1, 1]} : vector<8x32xf32> to vector<8x8xf32>
    %cst_8 = arith.constant dense<0.000000e+00> : vector<8x8xf32>
    %14 = tpu.matmul %11, %12, %cst_8 {dimension_numbers = #tpu.dot_dimension_numbers<[1], [1], [0], [0], [0, 0, 1, 0], [], []>} : vector<8x8xf32>, vector<8x8xf32>, vector<8x8xf32> -> vector<8x8xf32>
    %cst_9 = arith.constant 0.353553385 : f32
    %15 = vector.broadcast %cst_9 : f32 to vector<8x8xf32>
    %16 = arith.mulf %14, %15 : vector<8x8xf32>
    %cst_10 = arith.constant dense<0xFF800000> : vector<8xf32>
    %17 = vector.multi_reduction <maximumf>, %16, %cst_10 [1] : vector<8x8xf32> to vector<8xf32>
    %18 = vector.shape_cast %17 : vector<8xf32> to vector<8x1xf32>
    %19 = vector.broadcast %18 : vector<8x1xf32> to vector<8x8xf32>
    %20 = arith.subf %16, %19 : vector<8x8xf32>
    %21 = math.exp %20 : vector<8x8xf32>
    %cst_11 = arith.constant dense<0.000000e+00> : vector<8xf32>
    %22 = vector.multi_reduction <add>, %21, %cst_11 [1] : vector<8x8xf32> to vector<8xf32>
    %23 = vector.shape_cast %22 : vector<8xf32> to vector<8x1xf32>
    %24 = tpu.reciprocal %23 {approx = true} : vector<8x1xf32> -> vector<8x1xf32>
    %25 = vector.broadcast %24 : vector<8x1xf32> to vector<8x8xf32>
    %26 = arith.mulf %21, %25 : vector<8x8xf32>
    %cst_12 = arith.constant dense<0.000000e+00> : vector<8x8xf32>
    %27 = tpu.matmul %26, %13, %cst_12 {dimension_numbers = #tpu.dot_dimension_numbers<[1], [0], [0], [1], [0, 0, 1, 1], [], []>} : vector<8x8xf32>, vector<8x8xf32>, vector<8x8xf32> -> vector<8x8xf32>
    %28 = vector.extract_strided_slice %9 {offsets = [0, 0], sizes = [8, 32], strides = [1, 1]} : vector<32x32xf32> to vector<8x32xf32>
    %cst_13 = arith.constant dense<0.000000e+00> : vector<8x32xf32>
    %29 = tpu.matmul %27, %28, %cst_13 {dimension_numbers = #tpu.dot_dimension_numbers<[1], [0], [0], [1], [0, 0, 1, 1], [], []>} : vector<8x8xf32>, vector<8x32xf32>, vector<8x32xf32> -> vector<8x32xf32>
    %30 = arith.addf %10, %29 : vector<8x32xf32>
    %31 = vector.extract_strided_slice %6 {offsets = [0, 8], sizes = [8, 8], strides = [1, 1]} : vector<8x32xf32> to vector<8x8xf32>
    %32 = vector.extract_strided_slice %7 {offsets = [0, 8], sizes = [8, 8], strides = [1, 1]} : vector<8x32xf32> to vector<8x8xf32>
    %33 = vector.extract_strided_slice %8 {offsets = [0, 8], sizes = [8, 8], strides = [1, 1]} : vector<8x32xf32> to vector<8x8xf32>
    %cst_14 = arith.constant dense<0.000000e+00> : vector<8x8xf32>
    %34 = tpu.matmul %31, %32, %cst_14 {dimension_numbers = #tpu.dot_dimension_numbers<[1], [1], [0], [0], [0, 0, 1, 0], [], []>} : vector<8x8xf32>, vector<8x8xf32>, vector<8x8xf32> -> vector<8x8xf32>
    %cst_15 = arith.constant 0.353553385 : f32
    %35 = vector.broadcast %cst_15 : f32 to vector<8x8xf32>
    %36 = arith.mulf %34, %35 : vector<8x8xf32>
    %cst_16 = arith.constant dense<0xFF800000> : vector<8xf32>
    %37 = vector.multi_reduction <maximumf>, %36, %cst_16 [1] : vector<8x8xf32> to vector<8xf32>
    %38 = vector.shape_cast %37 : vector<8xf32> to vector<8x1xf32>
    %39 = vector.broadcast %38 : vector<8x1xf32> to vector<8x8xf32>
    %40 = arith.subf %36, %39 : vector<8x8xf32>
    %41 = math.exp %40 : vector<8x8xf32>
    %cst_17 = arith.constant dense<0.000000e+00> : vector<8xf32>
    %42 = vector.multi_reduction <add>, %41, %cst_17 [1] : vector<8x8xf32> to vector<8xf32>
    %43 = vector.shape_cast %42 : vector<8xf32> to vector<8x1xf32>
    %44 = tpu.reciprocal %43 {approx = true} : vector<8x1xf32> -> vector<8x1xf32>
    %45 = vector.broadcast %44 : vector<8x1xf32> to vector<8x8xf32>
    %46 = arith.mulf %41, %45 : vector<8x8xf32>
    %cst_18 = arith.constant dense<0.000000e+00> : vector<8x8xf32>
    %47 = tpu.matmul %46, %33, %cst_18 {dimension_numbers = #tpu.dot_dimension_numbers<[1], [0], [0], [1], [0, 0, 1, 1], [], []>} : vector<8x8xf32>, vector<8x8xf32>, vector<8x8xf32> -> vector<8x8xf32>
    %48 = vector.extract_strided_slice %9 {offsets = [8, 0], sizes = [8, 32], strides = [1, 1]} : vector<32x32xf32> to vector<8x32xf32>
    %cst_19 = arith.constant dense<0.000000e+00> : vector<8x32xf32>
    %49 = tpu.matmul %47, %48, %cst_19 {dimension_numbers = #tpu.dot_dimension_numbers<[1], [0], [0], [1], [0, 0, 1, 1], [], []>} : vector<8x8xf32>, vector<8x32xf32>, vector<8x32xf32> -> vector<8x32xf32>
    %50 = arith.addf %30, %49 : vector<8x32xf32>
    %51 = vector.extract_strided_slice %6 {offsets = [0, 16], sizes = [8, 8], strides = [1, 1]} : vector<8x32xf32> to vector<8x8xf32>
    %52 = vector.extract_strided_slice %7 {offsets = [0, 16], sizes = [8, 8], strides = [1, 1]} : vector<8x32xf32> to vector<8x8xf32>
    %53 = vector.extract_strided_slice %8 {offsets = [0, 16], sizes = [8, 8], strides = [1, 1]} : vector<8x32xf32> to vector<8x8xf32>
    %cst_20 = arith.constant dense<0.000000e+00> : vector<8x8xf32>
    %54 = tpu.matmul %51, %52, %cst_20 {dimension_numbers = #tpu.dot_dimension_numbers<[1], [1], [0], [0], [0, 0, 1, 0], [], []>} : vector<8x8xf32>, vector<8x8xf32>, vector<8x8xf32> -> vector<8x8xf32>
    %cst_21 = arith.constant 0.353553385 : f32
    %55 = vector.broadcast %cst_21 : f32 to vector<8x8xf32>
    %56 = arith.mulf %54, %55 : vector<8x8xf32>
    %cst_22 = arith.constant dense<0xFF800000> : vector<8xf32>
    %57 = vector.multi_reduction <maximumf>, %56, %cst_22 [1] : vector<8x8xf32> to vector<8xf32>
    %58 = vector.shape_cast %57 : vector<8xf32> to vector<8x1xf32>
    %59 = vector.broadcast %58 : vector<8x1xf32> to vector<8x8xf32>
    %60 = arith.subf %56, %59 : vector<8x8xf32>
    %61 = math.exp %60 : vector<8x8xf32>
    %cst_23 = arith.constant dense<0.000000e+00> : vector<8xf32>
    %62 = vector.multi_reduction <add>, %61, %cst_23 [1] : vector<8x8xf32> to vector<8xf32>
    %63 = vector.shape_cast %62 : vector<8xf32> to vector<8x1xf32>
    %64 = tpu.reciprocal %63 {approx = true} : vector<8x1xf32> -> vector<8x1xf32>
    %65 = vector.broadcast %64 : vector<8x1xf32> to vector<8x8xf32>
    %66 = arith.mulf %61, %65 : vector<8x8xf32>
    %cst_24 = arith.constant dense<0.000000e+00> : vector<8x8xf32>
    %67 = tpu.matmul %66, %53, %cst_24 {dimension_numbers = #tpu.dot_dimension_numbers<[1], [0], [0], [1], [0, 0, 1, 1], [], []>} : vector<8x8xf32>, vector<8x8xf32>, vector<8x8xf32> -> vector<8x8xf32>
    %68 = vector.extract_strided_slice %9 {offsets = [16, 0], sizes = [8, 32], strides = [1, 1]} : vector<32x32xf32> to vector<8x32xf32>
    %cst_25 = arith.constant dense<0.000000e+00> : vector<8x32xf32>
    %69 = tpu.matmul %67, %68, %cst_25 {dimension_numbers = #tpu.dot_dimension_numbers<[1], [0], [0], [1], [0, 0, 1, 1], [], []>} : vector<8x8xf32>, vector<8x32xf32>, vector<8x32xf32> -> vector<8x32xf32>
    %70 = arith.addf %50, %69 : vector<8x32xf32>
    %71 = vector.extract_strided_slice %6 {offsets = [0, 24], sizes = [8, 8], strides = [1, 1]} : vector<8x32xf32> to vector<8x8xf32>
    %72 = vector.extract_strided_slice %7 {offsets = [0, 24], sizes = [8, 8], strides = [1, 1]} : vector<8x32xf32> to vector<8x8xf32>
    %73 = vector.extract_strided_slice %8 {offsets = [0, 24], sizes = [8, 8], strides = [1, 1]} : vector<8x32xf32> to vector<8x8xf32>
    %cst_26 = arith.constant dense<0.000000e+00> : vector<8x8xf32>
    %74 = tpu.matmul %71, %72, %cst_26 {dimension_numbers = #tpu.dot_dimension_numbers<[1], [1], [0], [0], [0, 0, 1, 0], [], []>} : vector<8x8xf32>, vector<8x8xf32>, vector<8x8xf32> -> vector<8x8xf32>
    %cst_27 = arith.constant 0.353553385 : f32
    %75 = vector.broadcast %cst_27 : f32 to vector<8x8xf32>
    %76 = arith.mulf %74, %75 : vector<8x8xf32>
    %cst_28 = arith.constant dense<0xFF800000> : vector<8xf32>
    %77 = vector.multi_reduction <maximumf>, %76, %cst_28 [1] : vector<8x8xf32> to vector<8xf32>
    %78 = vector.shape_cast %77 : vector<8xf32> to vector<8x1xf32>
    %79 = vector.broadcast %78 : vector<8x1xf32> to vector<8x8xf32>
    %80 = arith.subf %76, %79 : vector<8x8xf32>
    %81 = math.exp %80 : vector<8x8xf32>
    %cst_29 = arith.constant dense<0.000000e+00> : vector<8xf32>
    %82 = vector.multi_reduction <add>, %81, %cst_29 [1] : vector<8x8xf32> to vector<8xf32>
    %83 = vector.shape_cast %82 : vector<8xf32> to vector<8x1xf32>
    %84 = tpu.reciprocal %83 {approx = true} : vector<8x1xf32> -> vector<8x1xf32>
    %85 = vector.broadcast %84 : vector<8x1xf32> to vector<8x8xf32>
    %86 = arith.mulf %81, %85 : vector<8x8xf32>
    %cst_30 = arith.constant dense<0.000000e+00> : vector<8x8xf32>
    %87 = tpu.matmul %86, %73, %cst_30 {dimension_numbers = #tpu.dot_dimension_numbers<[1], [0], [0], [1], [0, 0, 1, 1], [], []>} : vector<8x8xf32>, vector<8x8xf32>, vector<8x8xf32> -> vector<8x8xf32>
    %88 = vector.extract_strided_slice %9 {offsets = [24, 0], sizes = [8, 32], strides = [1, 1]} : vector<32x32xf32> to vector<8x32xf32>
    %cst_31 = arith.constant dense<0.000000e+00> : vector<8x32xf32>
    %89 = tpu.matmul %87, %88, %cst_31 {dimension_numbers = #tpu.dot_dimension_numbers<[1], [0], [0], [1], [0, 0, 1, 1], [], []>} : vector<8x8xf32>, vector<8x32xf32>, vector<8x32xf32> -> vector<8x32xf32>
    %90 = arith.addf %70, %89 : vector<8x32xf32>
    %c0_32 = arith.constant 0 : index
    %c0_33 = arith.constant 0 : index
    %91 = vector.load %arg5[%c0_32, %c0_33] : memref<1x32xf32, #tpu.memory_space<vmem>>, vector<1x32xf32>
    %92 = vector.broadcast %91 : vector<1x32xf32> to vector<8x32xf32>
    %93 = arith.addf %90, %92 : vector<8x32xf32>
    %94 = arith.addf %0, %93 : vector<8x32xf32>
    %cst_34 = arith.constant dense<0.000000e+00> : vector<8xf32>
    %95 = vector.multi_reduction <add>, %94, %cst_34 [1] : vector<8x32xf32> to vector<8xf32>
    %96 = vector.shape_cast %95 : vector<8xf32> to vector<8x1xf32>
    %cst_35 = arith.constant 3.200000e+01 : f32
    %97 = vector.broadcast %cst_35 : f32 to vector<8x1xf32>
    %98 = arith.divf %96, %97 : vector<8x1xf32>
    %99 = vector.broadcast %98 : vector<8x1xf32> to vector<8x32xf32>
    %100 = arith.subf %94, %99 : vector<8x32xf32>
    %101 = vector.broadcast %98 : vector<8x1xf32> to vector<8x32xf32>
    %102 = arith.subf %94, %101 : vector<8x32xf32>
    %103 = arith.mulf %100, %102 : vector<8x32xf32>
    %cst_36 = arith.constant dense<0.000000e+00> : vector<8xf32>
    %104 = vector.multi_reduction <add>, %103, %cst_36 [1] : vector<8x32xf32> to vector<8xf32>
    %105 = vector.shape_cast %104 : vector<8xf32> to vector<8x1xf32>
    %cst_37 = arith.constant 3.200000e+01 : f32
    %106 = vector.broadcast %cst_37 : f32 to vector<8x1xf32>
    %107 = arith.divf %105, %106 : vector<8x1xf32>
    %108 = vector.broadcast %98 : vector<8x1xf32> to vector<8x32xf32>
    %109 = arith.subf %94, %108 : vector<8x32xf32>
    %cst_38 = arith.constant 9.99999974E-6 : f32
    %110 = vector.broadcast %cst_38 : f32 to vector<8x1xf32>
    %111 = arith.addf %107, %110 : vector<8x1xf32>
    %112 = math.rsqrt %111 : vector<8x1xf32>
    %113 = vector.broadcast %112 : vector<8x1xf32> to vector<8x32xf32>
    %114 = arith.mulf %109, %113 : vector<8x32xf32>
    %c0_39 = arith.constant 0 : index
    %c0_40 = arith.constant 0 : index
    %115 = vector.load %arg6[%c0_39, %c0_40] : memref<1x32xf32, #tpu.memory_space<vmem>>, vector<1x32xf32>
    %116 = vector.broadcast %115 : vector<1x32xf32> to vector<8x32xf32>
    %117 = arith.mulf %114, %116 : vector<8x32xf32>
    %c0_41 = arith.constant 0 : index
    %c0_42 = arith.constant 0 : index
    %118 = vector.load %arg7[%c0_41, %c0_42] : memref<1x32xf32, #tpu.memory_space<vmem>>, vector<1x32xf32>
    %119 = vector.broadcast %118 : vector<1x32xf32> to vector<8x32xf32>
    %120 = arith.addf %117, %119 : vector<8x32xf32>
    %c0_43 = arith.constant 0 : index
    %c0_44 = arith.constant 0 : index
    %121 = vector.load %arg8[%c0_43, %c0_44] : memref<8x32xf32, #tpu.memory_space<vmem>>, vector<8x32xf32>
    tpu.vector_store %arg8[%c0_43, %c0_44], %120 {strides = array<i32>} : memref<8x32xf32, #tpu.memory_space<vmem>>, vector<8x32xf32>,
    return
  }
  func.func @transform_0(%arg0: i32) -> (i32, i32) {
    %c0_i32 = arith.constant 0 : i32
    %c0_i32_0 = arith.constant 0 : i32
    return %arg0, %c0_i32 : i32, i32
  }
  func.func @transform_1(%arg0: i32) -> (i32, i32) {
    %c0_i32 = arith.constant 0 : i32
    %c0_i32_0 = arith.constant 0 : i32
    %c0_i32_1 = arith.constant 0 : i32
    return %c0_i32, %c0_i32_0 : i32, i32
  }
  func.func @transform_2(%arg0: i32) -> (i32, i32) {
    %c0_i32 = arith.constant 0 : i32
    %c0_i32_0 = arith.constant 0 : i32
    %c0_i32_1 = arith.constant 0 : i32
    return %c0_i32, %c0_i32_0 : i32, i32
  }
  func.func @transform_3(%arg0: i32) -> (i32, i32) {
    %c0_i32 = arith.constant 0 : i32
    %c0_i32_0 = arith.constant 0 : i32
    %c0_i32_1 = arith.constant 0 : i32
    return %c0_i32, %c0_i32_0 : i32, i32
  }
  func.func @transform_4(%arg0: i32) -> (i32, i32) {
    %c0_i32 = arith.constant 0 : i32
    %c0_i32_0 = arith.constant 0 : i32
    %c0_i32_1 = arith.constant 0 : i32
    return %c0_i32, %c0_i32_0 : i32, i32
  }
  func.func @transform_5(%arg0: i32) -> (i32, i32) {
    %c0_i32 = arith.constant 0 : i32
    %c0_i32_0 = arith.constant 0 : i32
    %c0_i32_1 = arith.constant 0 : i32
    return %c0_i32, %c0_i32_0 : i32, i32
  }
  func.func @transform_6(%arg0: i32) -> (i32, i32) {
    %c0_i32 = arith.constant 0 : i32
    %c0_i32_0 = arith.constant 0 : i32
    %c0_i32_1 = arith.constant 0 : i32
    return %c0_i32, %c0_i32_0 : i32, i32
  }
  func.func @transform_7(%arg0: i32) -> (i32, i32) {
    %c0_i32 = arith.constant 0 : i32
    %c0_i32_0 = arith.constant 0 : i32
    return %arg0, %c0_i32 : i32, i32
  }
}

module attributes {stable_mosaic.version = 11 : i64} {
  func.func @_ffn_ln_kernel(%arg0: i32, %arg1: memref<8x32xf32, #tpu.memory_space<vmem>>, %arg2: memref<32x2048xbf16, #tpu.memory_space<vmem>>, %arg3: memref<1x2048xf32, #tpu.memory_space<vmem>>, %arg4: memref<2048x32xbf16, #tpu.memory_space<vmem>>, %arg5: memref<1x32xf32, #tpu.memory_space<vmem>>, %arg6: memref<1x32xf32, #tpu.memory_space<vmem>>, %arg7: memref<1x32xf32, #tpu.memory_space<vmem>>, %arg8: memref<8x32xf32, #tpu.memory_space<vmem>>) attributes {dimension_semantics = [#tpu.dimension_semantics<parallel>], iteration_bounds = array<i64: 2>, scalar_prefetch = 0 : i64, scratch_operands = 0 : i64, tpu.core_type = #tpu.core_type<tc>, window_params = [{transform_indices = @transform_0, window_bounds = array<i64: 8, 32>}, {pipeline_mode = #tpu.pipeline_mode<synchronous>, transform_indices = @transform_1, window_bounds = array<i64: 32, 2048>}, {pipeline_mode = #tpu.pipeline_mode<synchronous>, transform_indices = @transform_2, window_bounds = array<i64: 1, 2048>}, {pipeline_mode = #tpu.pipeline_mode<synchronous>, transform_indices = @transform_3, window_bounds = array<i64: 2048, 32>}, {pipeline_mode = #tpu.pipeline_mode<synchronous>, transform_indices = @transform_4, window_bounds = array<i64: 1, 32>}, {pipeline_mode = #tpu.pipeline_mode<synchronous>, transform_indices = @transform_5, window_bounds = array<i64: 1, 32>}, {pipeline_mode = #tpu.pipeline_mode<synchronous>, transform_indices = @transform_6, window_bounds = array<i64: 1, 32>}, {transform_indices = @transform_7, window_bounds = array<i64: 8, 32>}]} {
    %c0 = arith.constant 0 : index
    %c0_0 = arith.constant 0 : index
    %0 = vector.load %arg1[%c0, %c0_0] : memref<8x32xf32, #tpu.memory_space<vmem>>, vector<8x32xf32>
    %1 = arith.truncf %0 : vector<8x32xf32> to vector<8x32xbf16>
    %c0_1 = arith.constant 0 : index
    %c0_2 = arith.constant 0 : index
    %2 = vector.load %arg2[%c0_1, %c0_2] : memref<32x2048xbf16, #tpu.memory_space<vmem>>, vector<32x2048xbf16>
    %cst = arith.constant dense<0.000000e+00> : vector<8x2048xf32>
    %3 = tpu.matmul %1, %2, %cst {dimension_numbers = #tpu.dot_dimension_numbers<[1], [0], [0], [1], [0, 0, 1, 1], [], []>} : vector<8x32xbf16>, vector<32x2048xbf16>, vector<8x2048xf32> -> vector<8x2048xf32>
    %c0_3 = arith.constant 0 : index
    %c0_4 = arith.constant 0 : index
    %4 = vector.load %arg3[%c0_3, %c0_4] : memref<1x2048xf32, #tpu.memory_space<vmem>>, vector<1x2048xf32>
    %5 = vector.broadcast %4 : vector<1x2048xf32> to vector<8x2048xf32>
    %6 = arith.addf %3, %5 : vector<8x2048xf32>
    %cst_5 = arith.constant 0.000000e+00 : f32
    %7 = vector.broadcast %cst_5 : f32 to vector<8x2048xf32>
    %8 = arith.maximumf %6, %7 : vector<8x2048xf32>
    %9 = arith.truncf %8 : vector<8x2048xf32> to vector<8x2048xbf16>
    %c0_6 = arith.constant 0 : index
    %c0_7 = arith.constant 0 : index
    %10 = vector.load %arg4[%c0_6, %c0_7] : memref<2048x32xbf16, #tpu.memory_space<vmem>>, vector<2048x32xbf16>
    %cst_8 = arith.constant dense<0.000000e+00> : vector<8x32xf32>
    %11 = tpu.matmul %9, %10, %cst_8 {dimension_numbers = #tpu.dot_dimension_numbers<[1], [0], [0], [1], [0, 0, 1, 1], [], []>} : vector<8x2048xbf16>, vector<2048x32xbf16>, vector<8x32xf32> -> vector<8x32xf32>
    %c0_9 = arith.constant 0 : index
    %c0_10 = arith.constant 0 : index
    %12 = vector.load %arg5[%c0_9, %c0_10] : memref<1x32xf32, #tpu.memory_space<vmem>>, vector<1x32xf32>
    %13 = vector.broadcast %12 : vector<1x32xf32> to vector<8x32xf32>
    %14 = arith.addf %11, %13 : vector<8x32xf32>
    %15 = arith.addf %0, %14 : vector<8x32xf32>
    %cst_11 = arith.constant dense<0.000000e+00> : vector<8xf32>
    %16 = vector.multi_reduction <add>, %15, %cst_11 [1] : vector<8x32xf32> to vector<8xf32>
    %17 = vector.shape_cast %16 : vector<8xf32> to vector<8x1xf32>
    %cst_12 = arith.constant 3.200000e+01 : f32
    %18 = vector.broadcast %cst_12 : f32 to vector<8x1xf32>
    %19 = arith.divf %17, %18 : vector<8x1xf32>
    %20 = vector.broadcast %19 : vector<8x1xf32> to vector<8x32xf32>
    %21 = arith.subf %15, %20 : vector<8x32xf32>
    %22 = vector.broadcast %19 : vector<8x1xf32> to vector<8x32xf32>
    %23 = arith.subf %15, %22 : vector<8x32xf32>
    %24 = arith.mulf %21, %23 : vector<8x32xf32>
    %cst_13 = arith.constant dense<0.000000e+00> : vector<8xf32>
    %25 = vector.multi_reduction <add>, %24, %cst_13 [1] : vector<8x32xf32> to vector<8xf32>
    %26 = vector.shape_cast %25 : vector<8xf32> to vector<8x1xf32>
    %cst_14 = arith.constant 3.200000e+01 : f32
    %27 = vector.broadcast %cst_14 : f32 to vector<8x1xf32>
    %28 = arith.divf %26, %27 : vector<8x1xf32>
    %29 = vector.broadcast %19 : vector<8x1xf32> to vector<8x32xf32>
    %30 = arith.subf %15, %29 : vector<8x32xf32>
    %cst_15 = arith.constant 9.99999974E-6 : f32
    %31 = vector.broadcast %cst_15 : f32 to vector<8x1xf32>
    %32 = arith.addf %28, %31 : vector<8x1xf32>
    %33 = math.rsqrt %32 : vector<8x1xf32>
    %34 = vector.broadcast %33 : vector<8x1xf32> to vector<8x32xf32>
    %35 = arith.mulf %30, %34 : vector<8x32xf32>
    %c0_16 = arith.constant 0 : index
    %c0_17 = arith.constant 0 : index
    %36 = vector.load %arg6[%c0_16, %c0_17] : memref<1x32xf32, #tpu.memory_space<vmem>>, vector<1x32xf32>
    %37 = vector.broadcast %36 : vector<1x32xf32> to vector<8x32xf32>
    %38 = arith.mulf %35, %37 : vector<8x32xf32>
    %c0_18 = arith.constant 0 : index
    %c0_19 = arith.constant 0 : index
    %39 = vector.load %arg7[%c0_18, %c0_19] : memref<1x32xf32, #tpu.memory_space<vmem>>, vector<1x32xf32>
    %40 = vector.broadcast %39 : vector<1x32xf32> to vector<8x32xf32>
    %41 = arith.addf %38, %40 : vector<8x32xf32>
    %c0_20 = arith.constant 0 : index
    %c0_21 = arith.constant 0 : index
    %42 = vector.load %arg8[%c0_20, %c0_21] : memref<8x32xf32, #tpu.memory_space<vmem>>, vector<8x32xf32>
    tpu.vector_store %arg8[%c0_20, %c0_21], %41 {strides = array<i32>} : memref<8x32xf32, #tpu.memory_space<vmem>>, vector<8x32xf32>,
    return
  }
  func.func @transform_0(%arg0: i32) -> (i32, i32) {
    %c0_i32 = arith.constant 0 : i32
    %c0_i32_0 = arith.constant 0 : i32
    return %arg0, %c0_i32 : i32, i32
  }
  func.func @transform_1(%arg0: i32) -> (i32, i32) {
    %c0_i32 = arith.constant 0 : i32
    %c0_i32_0 = arith.constant 0 : i32
    %c0_i32_1 = arith.constant 0 : i32
    return %c0_i32, %c0_i32_0 : i32, i32
  }
  func.func @transform_2(%arg0: i32) -> (i32, i32) {
    %c0_i32 = arith.constant 0 : i32
    %c0_i32_0 = arith.constant 0 : i32
    %c0_i32_1 = arith.constant 0 : i32
    return %c0_i32, %c0_i32_0 : i32, i32
  }
  func.func @transform_3(%arg0: i32) -> (i32, i32) {
    %c0_i32 = arith.constant 0 : i32
    %c0_i32_0 = arith.constant 0 : i32
    %c0_i32_1 = arith.constant 0 : i32
    return %c0_i32, %c0_i32_0 : i32, i32
  }
  func.func @transform_4(%arg0: i32) -> (i32, i32) {
    %c0_i32 = arith.constant 0 : i32
    %c0_i32_0 = arith.constant 0 : i32
    %c0_i32_1 = arith.constant 0 : i32
    return %c0_i32, %c0_i32_0 : i32, i32
  }
  func.func @transform_5(%arg0: i32) -> (i32, i32) {
    %c0_i32 = arith.constant 0 : i32
    %c0_i32_0 = arith.constant 0 : i32
    %c0_i32_1 = arith.constant 0 : i32
    return %c0_i32, %c0_i32_0 : i32, i32
  }
  func.func @transform_6(%arg0: i32) -> (i32, i32) {
    %c0_i32 = arith.constant 0 : i32
    %c0_i32_0 = arith.constant 0 : i32
    %c0_i32_1 = arith.constant 0 : i32
    return %c0_i32, %c0_i32_0 : i32, i32
  }
  func.func @transform_7(%arg0: i32) -> (i32, i32) {
    %c0_i32 = arith.constant 0 : i32
    %c0_i32_0 = arith.constant 0 : i32
    return %arg0, %c0_i32 : i32, i32
  }
}

module attributes {stable_mosaic.version = 11 : i64} {
  func.func @_cls_kernel(%arg0: i32, %arg1: memref<16x32xf32, #tpu.memory_space<vmem>>, %arg2: memref<32x128xf32, #tpu.memory_space<vmem>>, %arg3: memref<1x128xf32, #tpu.memory_space<vmem>>, %arg4: memref<16x128xf32, #tpu.memory_space<vmem>>) attributes {dimension_semantics = [#tpu.dimension_semantics<arbitrary>], iteration_bounds = array<i64: 1>, scalar_prefetch = 0 : i64, scratch_operands = 0 : i64, tpu.core_type = #tpu.core_type<tc>, window_params = [{pipeline_mode = #tpu.pipeline_mode<synchronous>, transform_indices = @transform_0, window_bounds = array<i64: 16, 32>}, {pipeline_mode = #tpu.pipeline_mode<synchronous>, transform_indices = @transform_1, window_bounds = array<i64: 32, 128>}, {pipeline_mode = #tpu.pipeline_mode<synchronous>, transform_indices = @transform_2, window_bounds = array<i64: 1, 128>}, {pipeline_mode = #tpu.pipeline_mode<synchronous>, transform_indices = @transform_3, window_bounds = array<i64: 16, 128>}]} {
    %c0 = arith.constant 0 : index
    %c0_0 = arith.constant 0 : index
    %0 = vector.load %arg1[%c0, %c0_0] : memref<16x32xf32, #tpu.memory_space<vmem>>, vector<16x32xf32>
    %c0_1 = arith.constant 0 : index
    %c0_2 = arith.constant 0 : index
    %1 = vector.load %arg2[%c0_1, %c0_2] : memref<32x128xf32, #tpu.memory_space<vmem>>, vector<32x128xf32>
    %cst = arith.constant dense<0.000000e+00> : vector<16x128xf32>
    %2 = tpu.matmul %0, %1, %cst {dimension_numbers = #tpu.dot_dimension_numbers<[1], [0], [0], [1], [0, 0, 1, 1], [], []>} : vector<16x32xf32>, vector<32x128xf32>, vector<16x128xf32> -> vector<16x128xf32>
    %c0_3 = arith.constant 0 : index
    %c0_4 = arith.constant 0 : index
    %3 = vector.load %arg3[%c0_3, %c0_4] : memref<1x128xf32, #tpu.memory_space<vmem>>, vector<1x128xf32>
    %4 = vector.broadcast %3 : vector<1x128xf32> to vector<16x128xf32>
    %5 = arith.addf %2, %4 : vector<16x128xf32>
    %c0_5 = arith.constant 0 : index
    %c0_6 = arith.constant 0 : index
    %6 = vector.load %arg4[%c0_5, %c0_6] : memref<16x128xf32, #tpu.memory_space<vmem>>, vector<16x128xf32>
    tpu.vector_store %arg4[%c0_5, %c0_6], %5 {strides = array<i32>} : memref<16x128xf32, #tpu.memory_space<vmem>>, vector<16x128xf32>,
    return
  }
  func.func @transform_0(%arg0: i32) -> (i32, i32) {
    %c0_i32 = arith.constant 0 : i32
    %c0_i32_0 = arith.constant 0 : i32
    %c0_i32_1 = arith.constant 0 : i32
    return %c0_i32, %c0_i32_0 : i32, i32
  }
  func.func @transform_1(%arg0: i32) -> (i32, i32) {
    %c0_i32 = arith.constant 0 : i32
    %c0_i32_0 = arith.constant 0 : i32
    %c0_i32_1 = arith.constant 0 : i32
    return %c0_i32, %c0_i32_0 : i32, i32
  }
  func.func @transform_2(%arg0: i32) -> (i32, i32) {
    %c0_i32 = arith.constant 0 : i32
    %c0_i32_0 = arith.constant 0 : i32
    %c0_i32_1 = arith.constant 0 : i32
    return %c0_i32, %c0_i32_0 : i32, i32
  }
  func.func @transform_3(%arg0: i32) -> (i32, i32) {
    %c0_i32 = arith.constant 0 : i32
    %c0_i32_0 = arith.constant 0 : i32
    %c0_i32_1 = arith.constant 0 : i32
    return %c0_i32, %c0_i32_0 : i32, i32
  }
}

</mosaic_0001>

<bundles_post_ra>
// kernel: koios_forward.6
= control target key start
LH: loop header
LB: loop body
LE: loop exit
PB: predicated region body
PF: predicated region fallthrough
CT: control target
= control target key end

     0   :  { %vm30_vm0 = vcmask 130048   ;;  %vm112_vm1 = vcmask 261120   ;;  %s315_s2 = inlined_call_operand.vmem [shape: f32[32,32], index: 2, kind: input, shape index: {}]   ;;  %s316_s3 = inlined_call_operand.vmem [shape: f32[16,32], index: 3, kind: input, shape index: {}]   ;;  %s317_s1 = inlined_call_operand.vmem [shape: f32[16,16], index: 1, kind: input, shape index: {}]   ;;  %s318_s0 = inlined_call_operand.vmem [shape: f32[16,32], index: 0, kind: input, shape index: {}]   ;;  %s319_s4 = inlined_call_operand.vmem [shape: f32[1,32], index: 4, kind: input, shape index: {}]   ;;  %s320_s5 = inlined_call_operand.vmem [shape: f32[16,32], index: 5, kind: output, shape index: {}]  }
   0x1   :  { %v25_v0 = vld [vmem:[%s315_s2 + $0x18] sm:$0xff]  ;;  %v29_v1 = vld [vmem:[%s316_s3 + $0x8] sm:$0xff]  ;;  %v24_v2 = vld [vmem:[%s315_s2 + $0x10] sm:$0xff] }
   0x2   :  { %231 = vmatprep.subr.mxu1 %v25_v0  ;;  %224 = vmatprep.subr.mxu0 %v29_v1  ;;  %v28_v3 = vld [vmem:[%s316_s3] sm:$0xff]  ;;  %v23_v4 = vld [vmem:[%s315_s2 + $0x8] sm:$0xff] }
   0x3   :  { %232 = vmatpush3.msra.mxu1 %v25_v0  ;;  %225 = vmatpush3.msra.mxu0 %v29_v1  ;;  %v26_v5 = vld [vmem:[%s317_s1] sm:$0xff]  ;;  %v27_v6 = vld [vmem:[%s317_s1 + $0x8] sm:$0xff] }
   0x4   :  { %233 = vmatprep.subr.mxu1 %v24_v2  ;;  %226 = vmatprep.subr.mxu0 %v28_v3  ;;  %v22_v7 = vld [vmem:[%s315_s2] sm:$0xff]  ;;  %v21_v9 = vld [vmem:[%s318_s0 + $0x8] sm:$0xff] }
   0x5   :  { %234 = vmatpush3.msra.mxu1 %v24_v2  ;;  %227 = vmatpush3.msra.mxu0 %v28_v3  ;;  %v20_v8 = vld [vmem:[%s318_s0] sm:$0xff] }
   0x6   :  { %235 = vmatprep.subr.mxu1 %v23_v4  ;;  %228 = vmatprep.mubr.msk.f32.mxu0 %vm30_vm0, %v26_v5  ;;  %v213_v12 = vld [vmem:[%s319_s4] ss:$0 sm:$0xff] }
   0x7   :  { %236 = vmatpush3.msra.mxu1 %v23_v4  ;;  %229 = vmatmul.mubr.msk.f32.vlgmr.msra.gmra.mxu0 %vm30_vm0, %v27_v6 }
   0x8   :  { %237 = vmatprep.subr.mxu1 %v22_v7  ;;  %239 = vmatprep.mubr.msk.f32.mxu1 %vm112_vm1, %v20_v8 }
   0x9   :  { %238 = vmatpush3.msra.mxu1 %v22_v7 }
   0xa   :  { %240 = vmatmul.mubr.msk.f32.vlgmr.msra.gmra.mxu1 %vm112_vm1, %v21_v9 }
  0xc7   :  { %v230_v10 = vpop.f32.mrf.mxu0 }
  0xc9   :  { %v103_v14 = vpop.f32.mrf.mxu0 }
  0xca   :  { %v241_v11 = vpop.f32.mrf.mxu1 }
  0xcb   :  { %v191_v13 = vadd.f32 %v241_v11, %v230_v10 }
  0xcc   :  { %v185_v15 = vpop.f32.mrf.mxu1 }
  0xcd   :  { %v202_v16 = vadd.f32 %v213_v12, %v191_v13  ;;  %v186_v17 = vadd.f32 %v185_v15, %v103_v14 }
  0xcf   :  { %204 = vst.msk [vmem:[%s320_s5 + $0x8] sm:$0xff] %vm112_vm1, %v202_v16  ;;  %v201_v18 = vadd.f32 %v213_v12, %v186_v17 }
  0xd1   :  { %203 = vst.msk [vmem:[%s320_s5] sm:$0xff] %vm112_vm1, %v201_v18 }

// kernel: koios_forward.7
= control target key start
LH: loop header
LB: loop body
LE: loop exit
PB: predicated region body
PF: predicated region fallthrough
CT: control target
= control target key end

     0   :  { %s1645_s24 = smov 0   ;;  %s1793_s0 = inlined_call_operand.vmem [shape: f32[16,32], index: 0, kind: input, shape index: {}]   ;;  %s1794_s1 = inlined_call_operand.vmem [shape: f32[32,96], index: 1, kind: input, shape index: {}]   ;;  %s1795_s2 = inlined_call_operand.vmem [shape: f32[1,96], index: 2, kind: input, shape index: {}]   ;;  %s1796_s3 = inlined_call_operand.vmem [shape: f32[32,32], index: 3, kind: input, shape index: {}]   ;;  %s1797_s4 = inlined_call_operand.vmem [shape: f32[1,32], index: 4, kind: input, shape index: {}]   ;;  %s1798_s5 = inlined_call_operand.vmem [shape: f32[1,32], index: 5, kind: input, shape index: {}]   ;;  %s1799_s6 = inlined_call_operand.vmem [shape: f32[1,32], index: 6, kind: input, shape index: {}]   ;;  %s1800_s7 = inlined_call_operand.vmem [shape: f32[16,32], index: 7, kind: output, shape index: {}]  }
   0x1 LB: > { %s1415_s25 = sadd.s32 4294967295, %s1590_s24   ;;  %p1419_p0 = scmp.ge.s32.totalorder %s1590_s24, 1  ;;  %s1590_s24 = sphi %s1645_s24, %s17_s24  }
   0x2   : > { %p236_p1 = scmp.lt.s32.totalorder %s1590_s24, 3 }
   0x4   : > { %p237_p2 = pnand %p1419_p0, %p236_p1 }
   0x5   : > { %p266_p3 = scmp.lt.s32.totalorder (!%p237_p2), %s1415_s25, 1  ;;  %s1594_s17 = smov (!%p237_p2), 120  }
   0x6   : > { %240 = sbr.rel (%p237_p2) target bundleno = 2760 (0xac8), region = 48  ;;  %s1595_s18 = smov (!%p237_p2), 96  }
   0x7   : > { %s1596_s19 = smov (!%p237_p2), 88   ;;  %s1597_s20 = smov (!%p237_p2), 56  }
   0x8   : > { %s1598_s21 = smov (!%p237_p2), 64   ;;  %s1599_s22 = smov (!%p237_p2), 80  }
   0x9   : > { %s1600_s23 = smov (!%p237_p2), 112   ;;  %s1601_s30 = smov (!%p237_p2), 72  }
   0xa   : > { %s1602_s8 = smov (!%p237_p2), 104   ;;  %s1603_s10 = smov (!%p237_p2), 48  }
   0xb   : > { %v278_v0 = vld [vmem:[%s1794_s1 + $0x18] sm:$0xff]  ;;  %v1592_v1 = vmov 0.0   ;;  %v277_v2 = vld [vmem:[%s1794_s1 + $0x10] sm:$0xff]  ;;  %vm1593_vm0 = vmmov 0   ;;  %s1802_s25 = smov (!%p266_p3, %s1415_s25), 1  ;;  %v276_v3 = vld [vmem:[%s1794_s1 + $0x8] sm:$0xff] }
   0xc   : > { %1474 = vmatprep.subr.mxu0 %v1592_v1  ;;  %1482 = vmatprep.mubr.msk.f32.mxu0 %vm1593_vm0, %v1592_v1  ;;  %s1420_s9 = sshll.u32 %s1802_s25, 3  ;;  %v275_v4 = vld [vmem:[%s1794_s1] sm:$0xff]  ;;  %vm286_vm1 = vcmask 261120   ;;  %vm367_vm2 = vcmask 64512   ;;  %v361_v40 = vld [vmem:[%s1796_s3 + $0x8] sm:$0xff]  ;;  %s1604_s13 = smov 40  }
   0xd   : > { %1475 = vmatpush3.msra.mxu0 %v278_v0  ;;  %1485 = vmatprep.subr.mxu1 %v1592_v1  ;;  %s269_s14 = scalar_lea.vmem %s1793_s0, %s1420_s9  ;;  %v1422_v6 = vld [vmem:[%s1795_s2] ss:$0 sm:$0xff]  ;;  %s273_s26 = scalar_lea.vmem %s1800_s7, %s1420_s9 }
   0xe   : > { %1476 = vmatprep.subr.mxu0 %v1592_v1  ;;  %1487 = vmatprep.mubr.msk.f32.mxu1 %vm1593_vm0, %v1592_v1  ;;  %v1681_v5 = vld [vmem:[%s269_s14] sm:$0xff] }
   0xf   : > { %1477 = vmatpush3.msra.mxu0 %v277_v2  ;;  %v360_v39 = vld [vmem:[%s1796_s3] sm:$0xff] }
  0x10   : > { %1478 = vmatprep.subr.mxu0 %v1592_v1 }
  0x11   : > { %1479 = vmatpush3.msra.mxu0 %v276_v3 }
  0x12   : > { %1480 = vmatprep.subr.mxu0 %v1592_v1 }
  0x13   : > { %1481 = vmatpush3.msra.mxu0 %v275_v4  ;;  %v362_v4 = vld [vmem:[%s1796_s3 + $0x10] sm:$0xff] }
  0x14   : > { %1483 = vmatmul.mubr.msk.f32.vlgmr.msra.gmra.mxu0 %vm286_vm1, %v1681_v5  ;;  %1495 = vmatprep.subr.mxu0 %v1592_v1 }
  0x15   : > { %1497 = vmatprep.mubr.msk.f32.mxu0 %vm1593_vm0, %v1592_v1 }
  0xd4   : > { %v356_v7 = vpop.f32.mrf.mxu0 }
  0xd5   : > { %v1692_v8 = vadd.f32 %v1422_v6, %v356_v7 }
  0xd6   : > { %v1484_v9 = vpop.f32.mrf.mxu0 }
  0xd7   : > { %530 = vrot.lane.b32.xlu1 %v1692_v8, %s1594_s17  ;;  %365 = vrot.lane.b32.xlu0 %v1692_v8, %s1595_s18 }
  0xdb   : > { %532 = vrot.lane.b32.xlu0 %v1692_v8, %s1596_s19 }
 0x149   : > { %v366_v10 = vpop.permute.xlu0 %365  ;;  %v531_v12 = vpop.permute.xlu1 %530 }
 0x14a   : > { %1486 = vmatpush3.xpose.msk.msra.mxu1 %vm367_vm2, %v366_v10 }
 0x14b   : > { %1490 = vmatprep.subr.mxu1 %v1592_v1 }
 0x14d   : > { %1488 = vmatmul.mubr.msk.f32.vlgmr.msra.gmra.mxu1 %vm367_vm2, %v1692_v8  ;;  %v533_v11 = vpop.permute.xlu0 %532 }
 0x14e   : > { %1496 = vmatpush3.xpose.msk.msra.mxu0 %vm367_vm2, %v533_v11  ;;  %1492 = vmatprep.mubr.msk.f32.mxu1 %vm1593_vm0, %v1592_v1 }
 0x14f   : > { %1505 = vmatprep.subr.mxu0 %v1592_v1 }
 0x151   : > { %1498 = vmatmul.mubr.msk.f32.vlgmr.msra.gmra.mxu0 %vm367_vm2, %v531_v12 }
 0x152   : > { %1507 = vmatprep.mubr.msk.f32.mxu0 %vm1593_vm0, %v1592_v1  ;;  %1506 = vmatpush3.msra.mxu0 %v361_v40 }
 0x153   : > { %1515 = vmatprep.subr.mxu0 %v1592_v1 }
 0x20d   : > { %v438_v13 = vpop.f32.mrf.mxu1 }
 0x20e   : > { %v442_v14 = vmul.f32 0.35355338, %v438_v13 }
 0x20f   : > { %v1489_v15 = vpop.f32.mrf.mxu1 }
 0x210   : > { %v443_v16 = vsel %vm367_vm2, %v442_v14, -inf }
 0x211   : > { %444 = vmax.xlane.f32.xlu1 %v443_v16  ;;  %v604_v17 = vpop.f32.mrf.mxu0 }
 0x212   : > { %v608_v18 = vmul.f32 0.35355338, %v604_v17 }
 0x213   : > { %v1499_v19 = vpop.f32.mrf.mxu0 }
 0x214   : > { %v609_v20 = vsel %vm367_vm2, %v608_v18, -inf }
 0x215   : > { %610 = vmax.xlane.f32.xlu0 %v609_v20 }
 0x29a   : > { %v445_v21 = vpop.xlane.xlu1 %444 }
 0x29b   : > { %v446_v22 = vsub.f32 %v442_v14, %v445_v21 }
 0x29d   : > { %v447_v23 = vmul.f32 1.442695, %v446_v22 }
 0x29e   : > { %v611_v24 = vpop.xlane.xlu0 %610 }
 0x29f   : > { %1566 = vpow2.f32 %v447_v23  ;;  %v612_v25 = vsub.f32 %v608_v18, %v611_v24 }
 0x2a1   : > { %v613_v26 = vmul.f32 1.442695, %v612_v25 }
 0x2a3   : > { %1568 = vpow2.f32 %v613_v26 }
 0x2ac   : > { %v1567_v27 = vpop.eup %1566 }
 0x2ad   : > { %v449_v28 = vsel %vm367_vm2, %v1567_v27, 0.0 }
 0x2ae   : > { %450 = vadd.xlane.f32.xlu0 %v449_v28 }
 0x2b0   : > { %v1569_v29 = vpop.eup %1568 }
 0x2b1   : > { %v615_v30 = vsel %vm367_vm2, %v1569_v29, 0.0 }
 0x2b2   : > { %616 = vadd.xlane.f32.xlu1 %v615_v30 }
 0x2c3   : > { %620 = vrot.lane.b32.xlu1 %v1692_v8, %s1597_s20 }
 0x2c4   : > { %454 = vrot.lane.b32.xlu0 %v1692_v8, %s1598_s21 }
 0x2c7   : > { %844 = vrot.lane.b32.xlu1 %v1692_v8, %s1599_s22 }
 0x2c8   : > { %842 = vrot.lane.b32.xlu0 %v1692_v8, %s1600_s23 }
 0x337   : > { %v451_v31 = vpop.xlane.xlu0 %450 }
 0x338   : > { %1570 = vrcp.f32 %v451_v31 }
 0x33b   : > { %v617_v32 = vpop.xlane.xlu1 %616  ;;  %v455_v33 = vpop.permute.xlu0 %454 }
 0x33c   : > { %1572 = vrcp.f32 %v617_v32  ;;  %1491 = vmatpush3.msra.mxu1 %v455_v33 }
 0x33d   : > { %1500 = vmatprep.subr.mxu1 %v1592_v1 }
 0x33f   : > { %v621_v36 = vpop.permute.xlu1 %620  ;;  %v843_v46 = vpop.permute.xlu0 %842 }
 0x343   : > { %v845_v44 = vpop.permute.xlu1 %844 }
 0x345   : > { %v1571_v34 = vpop.eup %1570 }
 0x346   : > { %v453_v35 = vmul.f32 %v1571_v34, %v1567_v27  ;;  %v1440_v27 = vld [vmem:[%s1797_s4] ss:$0 sm:$0xff] }
 0x348   : > { %1493 = vmatmul.mubr.msk.f32.vlgmr.msra.gmra.mxu1 %vm367_vm2, %v453_v35 }
 0x349   : > { %v1573_v37 = vpop.eup %1572  ;;  %1501 = vmatpush3.msra.mxu1 %v621_v36  ;;  %1502 = vmatprep.mubr.msk.f32.mxu1 %vm1593_vm0, %v1592_v1 }
 0x34a   : > { %v619_v38 = vmul.f32 %v1573_v37, %v1569_v29  ;;  %1510 = vmatprep.subr.mxu1 %v1592_v1 }
 0x34c   : > { %1503 = vmatmul.mubr.msk.f32.vlgmr.msra.gmra.mxu1 %vm367_vm2, %v619_v38 }
 0x34d   : > { %1512 = vmatprep.mubr.msk.f32.mxu1 %vm1593_vm0, %v1592_v1  ;;  %1511 = vmatpush3.msra.mxu1 %v360_v39 }
 0x34e   : > { %1520 = vmatprep.subr.mxu1 %v1592_v1 }
 0x408   : > { %v526_v41 = vpop.f32.mrf.mxu1 }
 0x409   : > { %1513 = vmatmul.mubr.msk.f32.vlgmr.msra.gmra.mxu1 %vm367_vm2, %v526_v41 }
 0x40a   : > { %v1494_v42 = vpop.f32.mrf.mxu1  ;;  %1522 = vmatprep.mubr.msk.f32.mxu1 %vm1593_vm0, %v1592_v1 }
 0x40c   : > { %v692_v43 = vpop.f32.mrf.mxu1 }
 0x40d   : > { %1508 = vmatmul.mubr.msk.f32.vlgmr.msra.gmra.mxu0 %vm367_vm2, %v692_v43  ;;  %v1442_v43 = vld [vmem:[%s1799_s6] ss:$0 sm:$0xff] }
 0x40e   : > { %1516 = vmatpush3.xpose.msk.msra.mxu0 %vm367_vm2, %v845_v44  ;;  %v1504_v45 = vpop.f32.mrf.mxu1  ;;  %1517 = vmatprep.mubr.msk.f32.mxu0 %vm1593_vm0, %v1592_v1 }
 0x40f   : > { %1525 = vmatprep.subr.mxu0 %v1592_v1 }
 0x411   : > { %1518 = vmatmul.mubr.msk.f32.vlgmr.msra.gmra.mxu0 %vm367_vm2, %v843_v46 }
 0x412   : > { %1527 = vmatprep.mubr.msk.f32.mxu0 %vm1593_vm0, %v1592_v1  ;;  %1526 = vmatpush3.msra.mxu0 %v362_v4 }
 0x413   : > { %1535 = vmatprep.subr.mxu0 %v1592_v1 }
 0x4c9   : > { %v838_v47 = vpop.f32.mrf.mxu1 }
 0x4cb   : > { %v1514_v48 = vpop.f32.mrf.mxu1 }
 0x4cd   : > { %v765_v49 = vpop.f32.mrf.mxu0 }
 0x4ce   : > { %v839_v50 = vadd.f32 %v838_v47, %v765_v49 }
 0x4cf   : > { %v1509_v51 = vpop.f32.mrf.mxu0 }
 0x4d1   : > { %v916_v52 = vpop.f32.mrf.mxu0 }
 0x4d2   : > { %v920_v53 = vmul.f32 0.35355338, %v916_v52 }
 0x4d3   : > { %v1519_v54 = vpop.f32.mrf.mxu0 }
 0x4d4   : > { %v921_v55 = vsel %vm367_vm2, %v920_v53, -inf }
 0x4d5   : > { %922 = vmax.xlane.f32.xlu1 %v921_v55 }
 0x4e6   : > { %1084 = vrot.lane.b32.xlu1 %v1692_v8, %s1601_s30 }
 0x4ea   : > { %1082 = vrot.lane.b32.xlu1 %v1692_v8, %s1602_s8 }
 0x55e   : > { %v923_v56 = vpop.xlane.xlu1 %922 }
 0x55f   : > { %v924_v57 = vsub.f32 %v920_v53, %v923_v56 }
 0x561   : > { %v925_v58 = vmul.f32 1.442695, %v924_v57 }
 0x562   : > { %v1085_v0 = vpop.permute.xlu1 %1084 }
 0x563   : > { %1574 = vpow2.f32 %v925_v58 }
 0x566   : > { %v1083_v3 = vpop.permute.xlu1 %1082 }
 0x570   : > { %v1575_v59 = vpop.eup %1574 }
 0x571   : > { %v927_v60 = vsel %vm367_vm2, %v1575_v59, 0.0 }
 0x572   : > { %928 = vadd.xlane.f32.xlu0 %v927_v60 }
 0x588   : > { %932 = vrot.lane.b32.xlu0 %v1692_v8, %s1603_s10 }
 0x5fb   : > { %v929_v61 = vpop.xlane.xlu0 %928 }
 0x5fc   : > { %1576 = vrcp.f32 %v929_v61 }
 0x5ff   : > { %v933_v62 = vpop.permute.xlu0 %932 }
 0x600   : > { %1521 = vmatpush3.msra.mxu1 %v933_v62 }
 0x601   : > { %1530 = vmatprep.subr.mxu1 %v1592_v1 }
 0x609   : > { %v1577_v63 = vpop.eup %1576 }
 0x60a   : > { %v931_v2 = vmul.f32 %v1577_v63, %v1575_v59 }
 0x60c   : > { %1523 = vmatmul.mubr.msk.f32.vlgmr.msra.gmra.mxu1 %vm367_vm2, %v931_v2 }
 0x60d   : > { %1531 = vmatpush3.xpose.msk.msra.mxu1 %vm367_vm2, %v1085_v0  ;;  %1532 = vmatprep.mubr.msk.f32.mxu1 %vm1593_vm0, %v1592_v1 }
 0x60e   : > { %1540 = vmatprep.subr.mxu1 %v1592_v1 }
 0x610   : > { %1533 = vmatmul.mubr.msk.f32.vlgmr.msra.gmra.mxu1 %vm367_vm2, %v1083_v3 }
 0x611   : > { %1542 = vmatprep.mubr.msk.f32.mxu1 %vm1593_vm0, %v1592_v1 }
 0x6cc   : > { %v1004_v6 = vpop.f32.mrf.mxu1 }
 0x6cd   : > { %1528 = vmatmul.mubr.msk.f32.vlgmr.msra.gmra.mxu0 %vm367_vm2, %v1004_v6 }
 0x6ce   : > { %v1524_v7 = vpop.f32.mrf.mxu1  ;;  %1537 = vmatprep.mubr.msk.f32.mxu0 %vm1593_vm0, %v1592_v1  ;;  %v363_v1 = vld [vmem:[%s1796_s3 + $0x18] sm:$0xff] }
 0x6cf   : > { %1541 = vmatpush3.msra.mxu1 %v363_v1 }
 0x6d0   : > { %v1156_v9 = vpop.f32.mrf.mxu1 }
 0x6d1   : > { %v1160_v10 = vmul.f32 0.35355338, %v1156_v9 }
 0x6d2   : > { %v1534_v11 = vpop.f32.mrf.mxu1 }
 0x6d3   : > { %v1161_v12 = vsel %vm367_vm2, %v1160_v10, -inf }
 0x6d4   : > { %1162 = vmax.xlane.f32.xlu0 %v1161_v12 }
 0x6ea   : > { %1172 = vrot.lane.b32.xlu0 %v1692_v8, %s1604_s13 }
 0x75d   : > { %v1163_v13 = vpop.xlane.xlu0 %1162 }
 0x75e   : > { %v1164_v14 = vsub.f32 %v1160_v10, %v1163_v13 }
 0x760   : > { %v1165_v15 = vmul.f32 1.442695, %v1164_v14 }
 0x761   : > { %v1173_v16 = vpop.permute.xlu0 %1172 }
 0x762   : > { %1578 = vpow2.f32 %v1165_v15  ;;  %1536 = vmatpush3.msra.mxu0 %v1173_v16 }
 0x76f   : > { %v1579_v17 = vpop.eup %1578 }
 0x770   : > { %v1167_v18 = vsel %vm367_vm2, %v1579_v17, 0.0 }
 0x771   : > { %1168 = vadd.xlane.f32.xlu1 %v1167_v18 }
 0x78d   : > { %v1077_v19 = vpop.f32.mrf.mxu0 }
 0x78e   : > { %v1081_v20 = vadd.f32 %v1077_v19, %v839_v50 }
 0x78f   : > { %v1529_v21 = vpop.f32.mrf.mxu0 }
 0x7fa   : > { %v1169_v22 = vpop.xlane.xlu1 %1168 }
 0x7fb   : > { %1580 = vrcp.f32 %v1169_v22 }
 0x808   : > { %v1581_v8 = vpop.eup %1580 }
 0x809   : > { %v1171_v23 = vmul.f32 %v1581_v8, %v1579_v17 }
 0x80b   : > { %1538 = vmatmul.mubr.msk.f32.vlgmr.msra.gmra.mxu0 %vm367_vm2, %v1171_v23 }
 0x8cb   : > { %v1244_v24 = vpop.f32.mrf.mxu0 }
 0x8cc   : > { %1543 = vmatmul.mubr.msk.f32.vlgmr.msra.gmra.mxu1 %vm367_vm2, %v1244_v24 }
 0x8cd   : > { %v1539_v25 = vpop.f32.mrf.mxu0 }
 0x98c   : > { %v1317_v26 = vpop.f32.mrf.mxu1 }
 0x98d   : > { %v1321_v28 = vadd.f32 %v1317_v26, %v1081_v20 }
 0x98e   : > { %v1544_v29 = vpop.f32.mrf.mxu1 }
 0x98f   : > { %v1329_v30 = vadd.f32 %v1440_v27, %v1321_v28 }
 0x991   : > { %v1330_v31 = vadd.f32 %v1329_v30, %v1681_v5  ;;  %v1441_v5 = vld [vmem:[%s1798_s5] ss:$0 sm:$0xff] }
 0x993   : > { %v1331_v32 = vsel %vm286_vm1, %v1330_v31, 0.0 }
 0x994   : > { %1332 = vadd.xlane.f32.xlu1 %v1331_v32 }
 0xa1d   : > { %v1333_v33 = vpop.xlane.xlu1 %1332 }
 0xa1e   : > { %v1335_v34 = vmul.f32 0.03125, %v1333_v33 }
 0xa20   : > { %v1336_v35 = vsub.f32 %v1330_v31, %v1335_v34 }
 0xa22   : > { %v1337_v36 = vmul.f32 %v1336_v35, %v1336_v35 }
 0xa24   : > { %v1338_v37 = vsel %vm286_vm1, %v1337_v36, 0.0 }
 0xa25   : > { %1339 = vadd.xlane.f32.xlu1 %v1338_v37 }
 0xaae   : > { %v1340_v38 = vpop.xlane.xlu1 %1339 }
 0xaaf   : > { %v1341_v39 = vmul.f32 0.03125, %v1340_v38 }
 0xab1   : > { %v1342_v40 = vadd.f32 1e-05, %v1341_v39 }
 0xab3   : > { %1582 = vrsqrt.f32 %v1342_v40 }
 0xac0   : > { %v1583_v41 = vpop.eup %1582 }
 0xac1   : > { %v1344_v42 = vmul.f32 %v1583_v41, %v1336_v35 }
 0xac3   : > { %v1352_v44 = vmul.f32 %v1441_v5, %v1344_v42 }
 0xac5   : > { %v1360_v45 = vadd.f32 %v1442_v43, %v1352_v44 }
 0xac7   : > { %1361 = vst.msk [vmem:[%s273_s26] sm:$0xff] %vm286_vm1, %v1360_v45 }
 0xac8 PF: > { %s17_s24 = sadd.s32 1, %s1590_s24  }
 0xac9   : > { %p14_p4 = scmp.ge.s32.totalorder %s17_s24, 4  }
 0xacb   :  { %16 = sbr.rel (!%p14_p4) target bundleno = 1 (0x1), region = 78 }

// kernel: koios_forward.11
= control target key start
LH: loop header
LB: loop body
LE: loop exit
PB: predicated region body
PF: predicated region fallthrough
CT: control target
= control target key end

     0   :  { %vm27_vm0 = vcmask 261120   ;;  %s184_s1 = inlined_call_operand.vmem [shape: f32[32,128], index: 1, kind: input, shape index: {}]   ;;  %s185_s0 = inlined_call_operand.vmem [shape: f32[16,32], index: 0, kind: input, shape index: {}]   ;;  %s186_s2 = inlined_call_operand.vmem [shape: f32[1,128], index: 2, kind: input, shape index: {}]   ;;  %s187_s3 = inlined_call_operand.vmem [shape: f32[16,128], index: 3, kind: output, shape index: {}]  }
   0x1   :  { %v19_v0 = vld [vmem:[%s184_s1 + $0x18] sm:$0xff]  ;;  %v18_v1 = vld [vmem:[%s184_s1 + $0x10] sm:$0xff]  ;;  %v14_v2 = vld [vmem:[%s185_s0] sm:$0xff] }
   0x2   :  { %124 = vmatprep.subr.mxu0 %v19_v0  ;;  %v17_v3 = vld [vmem:[%s184_s1 + $0x8] sm:$0xff]  ;;  %132 = vmatprep.mubr.msk.f32.mxu0 %vm27_vm0, %v14_v2  ;;  %v16_v4 = vld [vmem:[%s184_s1] sm:$0xff] }
   0x3   :  { %125 = vmatpush3.msra.mxu0 %v19_v0  ;;  %v15_v5 = vld [vmem:[%s185_s0 + $0x8] sm:$0xff]  ;;  %v115_v6 = vld [vmem:[%s186_s2] ss:$0 sm:$0xff] }
   0x4   :  { %126 = vmatprep.subr.mxu0 %v18_v1 }
   0x5   :  { %127 = vmatpush3.msra.mxu0 %v18_v1 }
   0x6   :  { %128 = vmatprep.subr.mxu0 %v17_v3 }
   0x7   :  { %129 = vmatpush3.msra.mxu0 %v17_v3 }
   0x8   :  { %130 = vmatprep.subr.mxu0 %v16_v4 }
   0x9   :  { %131 = vmatpush3.msra.mxu0 %v16_v4 }
   0xa   :  { %133 = vmatmul.mubr.msk.f32.vlgmr.msra.gmra.mxu0 %vm27_vm0, %v15_v5 }
  0xca   :  { %v134_v7 = vpop.f32.mrf.mxu0 }
  0xcb   :  { %v106_v8 = vadd.f32 %v134_v7, %v115_v6 }
  0xcc   :  { %v100_v9 = vpop.f32.mrf.mxu0 }
  0xcd   :  { %110 = vst [vmem:[%s187_s3 + $0x8] sm:$0xff] %v106_v8  ;;  %v101_v10 = vadd.f32 %v115_v6, %v100_v9 }
  0xcf   :  { %109 = vst [vmem:[%s187_s3] sm:$0xff] %v101_v10 }

// kernel: koios_forward.8
= control target key start
LH: loop header
LB: loop body
LE: loop exit
PB: predicated region body
PF: predicated region fallthrough
CT: control target
= control target key end

     0   :  { %s2898_s24 = smov 0   ;;  %s3534_s0 = inlined_call_operand.vmem [shape: f32[16,32], index: 0, kind: input, shape index: {}]   ;;  %s3535_s1 = inlined_call_operand.vmem [shape: bf16[32,2048], index: 1, kind: input, shape index: {}]   ;;  %s3536_s2 = inlined_call_operand.vmem [shape: f32[1,2048], index: 2, kind: input, shape index: {}]   ;;  %s3537_s3 = inlined_call_operand.vmem [shape: bf16[2048,32], index: 3, kind: input, shape index: {}]   ;;  %s3538_s4 = inlined_call_operand.vmem [shape: f32[1,32], index: 4, kind: input, shape index: {}]   ;;  %s3539_s5 = inlined_call_operand.vmem [shape: f32[1,32], index: 5, kind: input, shape index: {}]   ;;  %s3540_s6 = inlined_call_operand.vmem [shape: f32[1,32], index: 6, kind: input, shape index: {}]   ;;  %s3541_s7 = inlined_call_operand.vmem [shape: f32[16,32], index: 7, kind: output, shape index: {}]  }
   0x1 LB: > { %s2353_s25 = sadd.s32 4294967295, %s2855_s24   ;;  %p2357_p0 = scmp.ge.s32.totalorder %s2855_s24, 1  ;;  %s2855_s24 = sphi %s2898_s24, %s17_s24  }
   0x2   : > { %p236_p1 = scmp.lt.s32.totalorder %s2855_s24, 3 }
   0x4   : > { %p237_p2 = pnand %p2357_p0, %p236_p1 }
   0x5   : > { %p2915_p3 = scmp.lt.s32.totalorder (!%p237_p2), %s2353_s25, 1 }
   0x6   : > { %240 = sbr.rel (%p237_p2) target bundleno = 833 (0x341), region = 48 }
   0xb   : > { %v293_v0 = vld [vmem:[%s3535_s1 + $0x80] sm:$0xff]  ;;  %v294_v2 = vld [vmem:[%s3535_s1 + $0x88] sm:$0xff]  ;;  %v2857_v8 = vmov 0   ;;  %s3544_s25 = smov (!%p2915_p3, %s2353_s25), 1  ;;  %v295_v14 = vld [vmem:[%s3535_s1 + $0x90] sm:$0xff]  ;;  %vm553_vm0 = vcmask 261120  }
   0xc   : > { %v301_v1 = vld [vmem:[%s3535_s1 + $0xc0] sm:$0xff]  ;;  %v302_v4 = vld [vmem:[%s3535_s1 + $0xc8] sm:$0xff]  ;;  %589 = vmatprep.mubr.bf16.mxu0 %v2857_v8  ;;  %630 = vmatprep.mubr.bf16.mxu1 %v2857_v8  ;;  %v303_v16 = vld [vmem:[%s3535_s1 + $0xd0] sm:$0xff]  ;;  %s2358_s30 = sshll.u32 %s3544_s25, 3 }
   0xd   : > { %v2377_v3 = vcombine.high %v293_v0, %v301_v1  ;;  %v2376_v5 = vcombine.low %v293_v0, %v301_v1  ;;  %v277_v6 = vld [vmem:[%s3535_s1] sm:$0xff]  ;;  %v2379_v9 = vcombine.high %v294_v2, %v302_v4  ;;  %v2378_v10 = vcombine.low %v294_v2, %v302_v4  ;;  %v278_v12 = vld [vmem:[%s3535_s1 + $0x8] sm:$0xff]  ;;  %v296_v17 = vld [vmem:[%s3535_s1 + $0x98] sm:$0xff]  ;;  %s2958_s10 = scalar_lea.vmem %s3534_s0, %s2358_s30  ;;  %s273_s14 = scalar_lea.vmem %s3541_s7, %s2358_s30 }
   0xe   : > { %v285_v7 = vld [vmem:[%s3535_s1 + $0x40] sm:$0xff]  ;;  %v286_v13 = vld [vmem:[%s3535_s1 + $0x48] sm:$0xff]  ;;  %v304_v18 = vld [vmem:[%s3535_s1 + $0xd8] sm:$0xff]  ;;  %v2381_v21 = vcombine.high %v295_v14, %v303_v16  ;;  %v2380_v29 = vcombine.low %v295_v14, %v303_v16 }
   0xf   : > { %v2361_v11 = vcombine.high %v277_v6, %v285_v7  ;;  %569 = vmatprep.subr.bf16.mxu0 %v2377_v3  ;;  %v2363_v15 = vcombine.high %v278_v12, %v286_v13  ;;  %610 = vmatprep.subr.bf16.mxu1 %v2379_v9  ;;  %v2360_v19 = vcombine.low %v277_v6, %v285_v7  ;;  %v275_v22 = vld [vmem:[%s2958_s10] sm:$0xff]  ;;  %v279_v24 = vld [vmem:[%s3535_s1 + $0x10] sm:$0xff]  ;;  %v280_v27 = vld [vmem:[%s3535_s1 + $0x18] sm:$0xff] }
  0x10   : > { %570 = vmatpush1.bf16.msra.mxu0 %v2376_v5  ;;  %611 = vmatpush1.bf16.msra.mxu1 %v2378_v10  ;;  %v2362_v20 = vcombine.low %v278_v12, %v286_v13  ;;  %v2383_v23 = vcombine.high %v296_v17, %v304_v18  ;;  %v287_v25 = vld [vmem:[%s3535_s1 + $0x50] sm:$0xff]  ;;  %v2967_v26 = vpack.c.bf16 %v275_v22, %v275_v22  ;;  %v288_v28 = vld [vmem:[%s3535_s1 + $0x58] sm:$0xff]  ;;  %v297_v33 = vld [vmem:[%s3535_s1 + $0xa0] sm:$0xff] }
  0x11   : > { %571 = vmatprep.subr.bf16.mxu0 %v2361_v11  ;;  %612 = vmatprep.subr.bf16.mxu1 %v2363_v15  ;;  %v2382_v30 = vcombine.low %v296_v17, %v304_v18  ;;  %v2365_v31 = vcombine.high %v279_v24, %v287_v25  ;;  %v2367_v32 = vcombine.high %v280_v27, %v288_v28  ;;  %v305_v34 = vld [vmem:[%s3535_s1 + $0xe0] sm:$0xff]  ;;  %v298_v35 = vld [vmem:[%s3535_s1 + $0xa8] sm:$0xff]  ;;  %v299_v46 = vld [vmem:[%s3535_s1 + $0xb0] sm:$0xff] }
  0x12   : > { %v306_v36 = vld [vmem:[%s3535_s1 + $0xe8] sm:$0xff]  ;;  %v2364_v37 = vcombine.low %v279_v24, %v287_v25  ;;  %v281_v38 = vld [vmem:[%s3535_s1 + $0x20] sm:$0xff]  ;;  %v2366_v39 = vcombine.low %v280_v27, %v288_v28  ;;  %v2385_v40 = vcombine.high %v297_v33, %v305_v34  ;;  %v2384_v45 = vcombine.low %v297_v33, %v305_v34  ;;  %v307_v49 = vld [vmem:[%s3535_s1 + $0xf0] sm:$0xff] }
  0x13   : > { %v289_v41 = vld [vmem:[%s3535_s1 + $0x60] sm:$0xff]  ;;  %v2387_v42 = vcombine.high %v298_v35, %v306_v36  ;;  %v282_v43 = vld [vmem:[%s3535_s1 + $0x28] sm:$0xff]  ;;  %v2386_v47 = vcombine.low %v298_v35, %v306_v36  ;;  %v300_v51 = vld [vmem:[%s3535_s1 + $0xb8] sm:$0xff]  ;;  %v2389_v56 = vcombine.high %v299_v46, %v307_v49  ;;  %v2388_v61 = vcombine.low %v299_v46, %v307_v49 }
  0x14   : > { %572 = vmatpush1.bf16.msra.mxu0 %v2360_v19  ;;  %613 = vmatpush1.bf16.msra.mxu1 %v2362_v20  ;;  %v290_v44 = vld [vmem:[%s3535_s1 + $0x68] sm:$0xff]  ;;  %v2369_v48 = vcombine.high %v281_v38, %v289_v41  ;;  %v308_v52 = vld [vmem:[%s3535_s1 + $0xf8] sm:$0xff]  ;;  %v2368_v53 = vcombine.low %v281_v38, %v289_v41  ;;  %v283_v54 = vld [vmem:[%s3535_s1 + $0x30] sm:$0xff] }
  0x15   : > { %651 = vmatprep.subr.bf16.mxu0 %v2381_v21  ;;  %692 = vmatprep.subr.bf16.mxu1 %v2383_v23  ;;  %v2371_v50 = vcombine.high %v282_v43, %v290_v44  ;;  %v2370_v55 = vcombine.low %v282_v43, %v290_v44  ;;  %v291_v57 = vld [vmem:[%s3535_s1 + $0x70] sm:$0xff]  ;;  %v2391_v58 = vcombine.high %v300_v51, %v308_v52  ;;  %v284_v59 = vld [vmem:[%s3535_s1 + $0x38] sm:$0xff]  ;;  %v2726_v11 = vld [vmem:[%s3537_s3 + $0x68] sm:$0xff]  }
  0x16   : > { %v292_v60 = vld [vmem:[%s3535_s1 + $0x78] sm:$0xff]  ;;  %v2390_v62 = vcombine.low %v300_v51, %v308_v52  ;;  %v2373_v63 = vcombine.high %v283_v54, %v291_v57  ;;  %v2372_v1 = vcombine.low %v283_v54, %v291_v57  ;;  %v2722_v7 = vld [vmem:[%s3537_s3 + $0x70] sm:$0xff]   ;;  %v2727_v12 = vld [vmem:[%s3537_s3 + $0xe8] sm:$0xff]  }
  0x17   : > { %2392 = vmatmul.mubr.msk.bf16.vlgmr.msra.gmra.mxu0 %vm553_vm0, %v2967_v26  ;;  %2393 = vmatmul.mubr.msk.bf16.vlgmr.msra.gmra.mxu1 %vm553_vm0, %v2967_v26  ;;  %v2375_v0 = vcombine.high %v284_v59, %v292_v60  ;;  %v2718_v2 = vld [vmem:[%s3537_s3 + $0x78] sm:$0xff]   ;;  %v2374_v3 = vcombine.low %v284_v59, %v292_v60  ;;  %v2723_v9 = vld [vmem:[%s3537_s3 + $0xf0] sm:$0xff]   ;;  %v2728_v13 = vld [vmem:[%s3537_s3 + $0x28] sm:$0xff]  }
  0x18   : > { %652 = vmatpush1.bf16.msra.mxu0 %v2380_v29  ;;  %693 = vmatpush1.bf16.msra.mxu1 %v2382_v30  ;;  %v2719_v4 = vld [vmem:[%s3537_s3 + $0xf8] sm:$0xff]   ;;  %v2725_v10 = vld [vmem:[%s3537_s3 + $0xb0] sm:$0xff]   ;;  %v2729_v14 = vld [vmem:[%s3537_s3 + $0xa8] sm:$0xff]  }
  0x19   : > { %653 = vmatprep.subr.bf16.mxu0 %v2365_v31  ;;  %694 = vmatprep.subr.bf16.mxu1 %v2367_v32  ;;  %v2720_v5 = vld [vmem:[%s3537_s3 + $0x38] sm:$0xff]   ;;  %v2730_v15 = vld [vmem:[%s3537_s3 + $0x60] sm:$0xff]   ;;  %v2738_v23 = vld [vmem:[%s3537_s3 + $0x50] sm:$0xff]  }
  0x1a   : > { %671 = vmatprep.mubr.bf16.mxu0 %v2857_v8  ;;  %712 = vmatprep.mubr.bf16.mxu1 %v2857_v8  ;;  %v2721_v6 = vld [vmem:[%s3537_s3 + $0xb8] sm:$0xff]   ;;  %v2731_v16 = vld [vmem:[%s3537_s3 + $0xe0] sm:$0xff]   ;;  %v2739_v24 = vld [vmem:[%s3537_s3 + $0xd0] sm:$0xff]  }
  0x1b   : > { %v2732_v17 = vld [vmem:[%s3537_s3 + $0x20] sm:$0xff]   ;;  %v2734_v19 = vld [vmem:[%s3537_s3 + $0x58] sm:$0xff]   ;;  %v2740_v25 = vld [vmem:[%s3537_s3 + $0x10] sm:$0xff]  }
  0x1c   : > { %654 = vmatpush1.bf16.msra.mxu0 %v2364_v37  ;;  %695 = vmatpush1.bf16.msra.mxu1 %v2366_v39  ;;  %v2733_v18 = vld [vmem:[%s3537_s3 + $0xa0] sm:$0xff]   ;;  %v2735_v20 = vld [vmem:[%s3537_s3 + $0xd8] sm:$0xff]   ;;  %v2742_v27 = vld [vmem:[%s3537_s3 + $0x48] sm:$0xff]   ;;  %v313_v37 = vlaneseq }
  0x1d   : > { %733 = vmatprep.subr.bf16.mxu0 %v2385_v40  ;;  %774 = vmatprep.subr.bf16.mxu1 %v2387_v42  ;;  %v2736_v21 = vld [vmem:[%s3537_s3 + $0x18] sm:$0xff]   ;;  %v2743_v28 = vld [vmem:[%s3537_s3 + $0xc8] sm:$0xff]   ;;  %v2746_v31 = vld [vmem:[%s3537_s3 + $0x40] sm:$0xff]  }
  0x1e   : > { %v2737_v22 = vld [vmem:[%s3537_s3 + $0x98] sm:$0xff]   ;;  %v2744_v29 = vld [vmem:[%s3537_s3 + $0x8] sm:$0xff]   ;;  %v2747_v32 = vld [vmem:[%s3537_s3 + $0xc0] sm:$0xff]   ;;  %v3147_v38 = vshrl.u32 %v313_v37, 7 }
  0x1f   : > { %2394 = vmatmul.mubr.msk.bf16.vlgmr.msra.gmra.mxu0 %vm553_vm0, %v2967_v26  ;;  %2395 = vmatmul.mubr.msk.bf16.vlgmr.msra.gmra.mxu1 %vm553_vm0, %v2967_v26  ;;  %v2745_v30 = vld [vmem:[%s3537_s3 + $0x88] sm:$0xff]   ;;  %v2748_v33 = vld [vmem:[%s3537_s3] sm:$0xff]   ;;  %v2750_v35 = vld [vmem:[%s3537_s3 + $0x178] sm:$0xff]  }
  0x20   : > { %734 = vmatpush1.bf16.msra.mxu0 %v2384_v45  ;;  %775 = vmatpush1.bf16.msra.mxu1 %v2386_v47  ;;  %v2749_v34 = vld [vmem:[%s3537_s3 + $0x80] sm:$0xff]   ;;  %v2751_v36 = vld [vmem:[%s3537_s3 + $0x1f8] sm:$0xff]   ;;  %v315_v39 = vsub.s32 0, %v3147_v38  ;;  %v323_v41 = vsub.s32 2, %v3147_v38  ;;  %v319_v42 = vsub.s32 1, %v3147_v38  ;;  %v327_v43 = vsub.s32 3, %v3147_v38 }
  0x21   : > { %735 = vmatprep.subr.bf16.mxu0 %v2369_v48  ;;  %776 = vmatprep.subr.bf16.mxu1 %v2371_v50  ;;  %v3153_v40 = vld [vmem:[%s3536_s2] sm:$0xff]  ;;  %v343_v60 = vsub.s32 7, %v3147_v38 }
  0x22   : > { %753 = vmatprep.mubr.bf16.mxu0 %v2857_v8  ;;  %794 = vmatprep.mubr.bf16.mxu1 %v2857_v8  ;;  %v316_v44 = vrot.slane %v3153_v40, %v315_v39  ;;  %v324_v45 = vrot.slane %v3153_v40, %v323_v41  ;;  %v320_v46 = vrot.slane %v3153_v40, %v319_v42  ;;  %v2764_v37 = vld [vmem:[%s3537_s3 + $0x120] sm:$0xff]  }
  0x23   : > { %v328_v48 = vrot.slane %v3153_v40, %v327_v43 }
  0x24   : > { %736 = vmatpush1.bf16.msra.mxu0 %v2368_v53  ;;  %777 = vmatpush1.bf16.msra.mxu1 %v2370_v55  ;;  %v335_v55 = vsub.s32 5, %v3147_v38 }
  0x25   : > { %815 = vmatprep.subr.bf16.mxu0 %v2389_v56  ;;  %856 = vmatprep.subr.bf16.mxu1 %v2391_v58 }
  0x27   : > { %2396 = vmatmul.mubr.msk.bf16.vlgmr.msra.gmra.mxu0 %vm553_vm0, %v2967_v26  ;;  %2397 = vmatmul.mubr.msk.bf16.vlgmr.msra.gmra.mxu1 %vm553_vm0, %v2967_v26 }
  0x28   : > { %816 = vmatpush1.bf16.msra.mxu0 %v2388_v61  ;;  %857 = vmatpush1.bf16.msra.mxu1 %v2390_v62 }
  0x29   : > { %817 = vmatprep.subr.bf16.mxu0 %v2373_v63  ;;  %858 = vmatprep.subr.bf16.mxu1 %v2375_v0 }
  0x2a   : > { %835 = vmatprep.mubr.bf16.mxu0 %v2857_v8  ;;  %876 = vmatprep.mubr.bf16.mxu1 %v2857_v8  ;;  %v2724_v8 = vld [vmem:[%s3537_s3 + $0x30] sm:$0xff]  }
  0x2c   : > { %818 = vmatpush1.bf16.msra.mxu0 %v2372_v1  ;;  %859 = vmatpush1.bf16.msra.mxu1 %v2374_v3 }
  0x2d   : > { %2533 = vmatprep.subr.bf16.mxu0 %v2718_v2  ;;  %2555 = vmatprep.subr.bf16.mxu1 %v2719_v4  ;;  %v2752_v4 = vld [vmem:[%s3537_s3 + $0x138] sm:$0xff]  }
  0x2f   : > { %2398 = vmatmul.mubr.msk.bf16.vlgmr.msra.gmra.mxu0 %vm553_vm0, %v2967_v26  ;;  %2399 = vmatmul.mubr.msk.bf16.vlgmr.msra.gmra.mxu1 %vm553_vm0, %v2967_v26  ;;  %v2741_v26 = vld [vmem:[%s3537_s3 + $0x90] sm:$0xff]  }
  0x30   : > { %2534 = vmatpush3.bf16.msra.mxu0 %v2720_v5  ;;  %2556 = vmatpush3.bf16.msra.mxu1 %v2721_v6  ;;  %v336_v5 = vrot.slane %v3153_v40, %v335_v55 }
  0x31   : > { %2535 = vmatprep.subr.bf16.mxu0 %v2722_v7  ;;  %2557 = vmatprep.subr.bf16.mxu1 %v2723_v9  ;;  %v2753_v9 = vld [vmem:[%s3537_s3 + $0x1b8] sm:$0xff]  }
  0x34   : > { %2536 = vmatpush3.bf16.msra.mxu0 %v2724_v8  ;;  %2558 = vmatpush3.bf16.msra.mxu1 %v2725_v10  ;;  %v2754_v8 = vld [vmem:[%s3537_s3 + $0x170] sm:$0xff]  }
  0x35   : > { %2537 = vmatprep.subr.bf16.mxu0 %v2726_v11  ;;  %2559 = vmatprep.subr.bf16.mxu1 %v2727_v12  ;;  %v344_v11 = vrot.slane %v3153_v40, %v343_v60  ;;  %v2755_v12 = vld [vmem:[%s3537_s3 + $0x1f0] sm:$0xff]  }
  0x38   : > { %2538 = vmatpush3.bf16.msra.mxu0 %v2728_v13  ;;  %2560 = vmatpush3.bf16.msra.mxu1 %v2729_v14 }
  0x39   : > { %2539 = vmatprep.subr.bf16.mxu0 %v2730_v15  ;;  %2561 = vmatprep.subr.bf16.mxu1 %v2731_v16  ;;  %v2756_v15 = vld [vmem:[%s3537_s3 + $0x130] sm:$0xff]  }
  0x3c   : > { %2540 = vmatpush3.bf16.msra.mxu0 %v2732_v17  ;;  %2562 = vmatpush3.bf16.msra.mxu1 %v2733_v18  ;;  %v2757_v18 = vld [vmem:[%s3537_s3 + $0x1b0] sm:$0xff]  }
  0x3d   : > { %2541 = vmatprep.subr.bf16.mxu0 %v2734_v19  ;;  %2563 = vmatprep.subr.bf16.mxu1 %v2735_v20  ;;  %v2758_v19 = vld [vmem:[%s3537_s3 + $0x168] sm:$0xff]  }
  0x40   : > { %2542 = vmatpush3.bf16.msra.mxu0 %v2736_v21  ;;  %2564 = vmatpush3.bf16.msra.mxu1 %v2737_v22  ;;  %v2759_v22 = vld [vmem:[%s3537_s3 + $0x1e8] sm:$0xff]  }
  0x41   : > { %2543 = vmatprep.subr.bf16.mxu0 %v2738_v23  ;;  %2565 = vmatprep.subr.bf16.mxu1 %v2739_v24 }
  0x44   : > { %2544 = vmatpush3.bf16.msra.mxu0 %v2740_v25  ;;  %2566 = vmatpush3.bf16.msra.mxu1 %v2741_v26 }
  0x45   : > { %2545 = vmatprep.subr.bf16.mxu0 %v2742_v27  ;;  %2567 = vmatprep.subr.bf16.mxu1 %v2743_v28  ;;  %v2760_v27 = vld [vmem:[%s3537_s3 + $0x128] sm:$0xff]  }
  0x48   : > { %2546 = vmatpush3.bf16.msra.mxu0 %v2744_v29  ;;  %2568 = vmatpush3.bf16.msra.mxu1 %v2745_v30  ;;  %v2761_v30 = vld [vmem:[%s3537_s3 + $0x1a8] sm:$0xff]  }
  0x49   : > { %2547 = vmatprep.subr.bf16.mxu0 %v2746_v31  ;;  %2569 = vmatprep.subr.bf16.mxu1 %v2747_v32  ;;  %v2762_v31 = vld [vmem:[%s3537_s3 + $0x160] sm:$0xff]  }
  0x4c   : > { %2548 = vmatpush3.bf16.msra.mxu0 %v2748_v33  ;;  %2570 = vmatpush3.bf16.msra.mxu1 %v2749_v34  ;;  %v2763_v34 = vld [vmem:[%s3537_s3 + $0x1e0] sm:$0xff]  }
  0x4d   : > { %2577 = vmatprep.subr.bf16.mxu0 %v2750_v35  ;;  %2599 = vmatprep.subr.bf16.mxu1 %v2751_v36 }
  0xd7   : > { %v591_v47 = vpop.f32.mrf.mxu0  ;;  %v632_v50 = vpop.f32.mrf.mxu1 }
  0xd8   : > { %v592_v49 = vadd.f32 %v591_v47, %v316_v44  ;;  %v633_v51 = vadd.f32 %v632_v50, %v324_v45  ;;  %v331_v44 = vsub.s32 4, %v3147_v38  ;;  %v2766_v47 = vld [vmem:[%s3537_s3 + $0x158] sm:$0xff]  }
  0xd9   : > { %v593_v52 = vpop.f32.mrf.mxu0  ;;  %v634_v54 = vpop.f32.mrf.mxu1 }
  0xda   : > { %v594_v53 = vadd.f32 %v593_v52, %v320_v46  ;;  %v885_v56 = vmax.f32 %v592_v49, 0.0  ;;  %v887_v57 = vmax.f32 %v633_v51, 0.0  ;;  %v635_v58 = vadd.f32 %v634_v54, %v328_v48  ;;  %v2765_v46 = vld [vmem:[%s3537_s3 + $0x1a0] sm:$0xff]   ;;  %v3236_v49 = vld [vmem:[%s3536_s2 + $0x8] sm:$0xff]  ;;  %v2767_v51 = vld [vmem:[%s3537_s3 + $0x1d8] sm:$0xff]  }
  0xdb   : > { %v595_v59 = vpop.f32.mrf.mxu0  ;;  %v636_v62 = vpop.f32.mrf.mxu1  ;;  %v339_v48 = vsub.s32 6, %v3147_v38  ;;  %v2810_v38 = vld [vmem:[%s3537_s3 + $0x240] sm:$0xff]  }
  0xdc   : > { %v886_v61 = vmax.f32 %v594_v53, 0.0  ;;  %v888_v63 = vmax.f32 %v635_v58, 0.0  ;;  %v903_v1 = vpack.c.bf16 %v887_v57, %v887_v57  ;;  %v901_v6 = vpack.c.bf16 %v885_v56, %v885_v56  ;;  %v2768_v57 = vld [vmem:[%s3537_s3 + $0x118] sm:$0xff]  }
  0xdd   : > { %v596_v0 = vpop.f32.mrf.mxu0  ;;  %v637_v3 = vpop.f32.mrf.mxu1  ;;  %v364_v53 = vrot.slane %v3236_v49, %v331_v44  ;;  %v372_v56 = vrot.slane %v3236_v49, %v339_v48  ;;  %v2769_v59 = vld [vmem:[%s3537_s3 + $0x198] sm:$0xff]  }
  0xde   : > { %v902_v2 = vpack.c.bf16 %v886_v61, %v886_v61  ;;  %v904_v7 = vpack.c.bf16 %v888_v63, %v888_v63  ;;  %v2770_v61 = vld [vmem:[%s3537_s3 + $0x150] sm:$0xff]  }
  0xdf   : > { %v3184_v10 = vpop.f32.mrf.mxu0  ;;  %v3192_v13 = vpop.f32.mrf.mxu1  ;;  %v2771_v63 = vld [vmem:[%s3537_s3 + $0x1d0] sm:$0xff]  }
  0xe0   : > { %1980 = vmatprep.mubr.bf16.mxu0 %v902_v2  ;;  %2020 = vmatprep.mubr.bf16.mxu1 %v904_v7  ;;  %v332_v7 = vrot.slane %v3153_v40, %v331_v44 }
  0xe1   : > { %1981 = vmatmul.mubr.bf16.vlgmr.msra.gmra.mxu0 %v901_v6  ;;  %v675_v14 = vpop.f32.mrf.mxu0  ;;  %2021 = vmatmul.mubr.bf16.vlgmr.msra.gmra.mxu1 %v903_v1  ;;  %v716_v17 = vpop.f32.mrf.mxu1 }
  0xe2   : > { %2578 = vmatpush3.bf16.msra.mxu0 %v2752_v4  ;;  %v676_v16 = vadd.f32 %v675_v14, %v336_v5  ;;  %2600 = vmatpush3.bf16.msra.mxu1 %v2753_v9  ;;  %v717_v21 = vadd.f32 %v716_v17, %v344_v11  ;;  %v340_v4 = vrot.slane %v3153_v40, %v339_v48  ;;  %v2772_v5 = vld [vmem:[%s3537_s3 + $0x110] sm:$0xff]   ;;  %v2790_v48 = vld [vmem:[%s3537_s3 + $0x268] sm:$0xff]  }
  0xe3   : > { %2579 = vmatprep.subr.bf16.mxu0 %v2754_v8  ;;  %v677_v20 = vpop.f32.mrf.mxu0  ;;  %2601 = vmatprep.subr.bf16.mxu1 %v2755_v12  ;;  %v718_v24 = vpop.f32.mrf.mxu1  ;;  %v2773_v9 = vld [vmem:[%s3537_s3 + $0x190] sm:$0xff]   ;;  %v2774_v8 = vld [vmem:[%s3537_s3 + $0x148] sm:$0xff]   ;;  %v352_v40 = vrot.slane %v3236_v49, %v319_v42 }
  0xe4   : > { %v890_v23 = vmax.f32 %v676_v16, 0.0  ;;  %v892_v25 = vmax.f32 %v717_v21, 0.0  ;;  %v2775_v12 = vld [vmem:[%s3537_s3 + $0x1c8] sm:$0xff]   ;;  %v715_v17 = vadd.f32 %v3192_v13, %v340_v4  ;;  %v674_v20 = vadd.f32 %v3184_v10, %v332_v7  ;;  %v2779_v13 = vld [vmem:[%s3537_s3 + $0x1c0] sm:$0xff]  }
  0xe5   : > { %v678_v26 = vpop.f32.mrf.mxu0  ;;  %v719_v29 = vpop.f32.mrf.mxu1  ;;  %v2777_v42 = vld [vmem:[%s3537_s3 + $0x188] sm:$0xff]   ;;  %v2780_v10 = vld [vmem:[%s3537_s3 + $0x100] sm:$0xff]   ;;  %v356_v4 = vrot.slane %v3236_v49, %v323_v41  ;;  %v348_v7 = vrot.slane %v3236_v49, %v315_v39  ;;  %v376_v39 = vrot.slane %v3236_v49, %v343_v60 }
  0xe6   : > { %2580 = vmatpush3.bf16.msra.mxu0 %v2756_v15  ;;  %v906_v28 = vpack.c.bf16 %v890_v23, %v890_v23  ;;  %2602 = vmatpush3.bf16.msra.mxu1 %v2757_v18  ;;  %v908_v32 = vpack.c.bf16 %v892_v25, %v892_v25  ;;  %v360_v15 = vrot.slane %v3236_v49, %v327_v43  ;;  %v2776_v18 = vld [vmem:[%s3537_s3 + $0x108] sm:$0xff]   ;;  %v2778_v43 = vld [vmem:[%s3537_s3 + $0x140] sm:$0xff]   ;;  %v891_v23 = vmax.f32 %v715_v17, 0.0  ;;  %v2782_v26 = vld [vmem:[%s3537_s3 + $0x278] sm:$0xff]  }
  0xe7   : > { %2581 = vmatprep.subr.bf16.mxu0 %v2758_v19  ;;  %v3215_v33 = vpop.f32.mrf.mxu0  ;;  %2603 = vmatprep.subr.bf16.mxu1 %v2759_v22  ;;  %v3220_v35 = vpop.f32.mrf.mxu1  ;;  %v889_v24 = vmax.f32 %v674_v20, 0.0  ;;  %v2781_v25 = vld [vmem:[%s3537_s3 + $0x180] sm:$0xff]   ;;  %v2807_v41 = vld [vmem:[%s3537_s3 + $0x2c8] sm:$0xff]  }
  0xe8   : > { %2060 = vmatprep.mubr.bf16.mxu0 %v906_v28  ;;  %2100 = vmatprep.mubr.bf16.mxu1 %v908_v32  ;;  %v2813_v17 = vld [vmem:[%s3537_s3 + $0x280] sm:$0xff]  }
  0xe9   : > { %v757_v36 = vpop.f32.mrf.mxu0  ;;  %v798_v45 = vpop.f32.mrf.mxu1  ;;  %v905_v32 = vpack.c.bf16 %v889_v24, %v889_v24  ;;  %v2820_v24 = vld [vmem:[%s3537_s3 + $0x330] sm:$0xff]  }
  0xea   : > { %2582 = vmatpush3.bf16.msra.mxu0 %v2760_v27  ;;  %2604 = vmatpush3.bf16.msra.mxu1 %v2761_v30  ;;  %v758_v21 = vadd.f32 %v757_v36, %v352_v40  ;;  %v799_v22 = vadd.f32 %v798_v45, %v360_v15  ;;  %v2783_v27 = vld [vmem:[%s3537_s3 + $0x2f8] sm:$0xff]   ;;  %v907_v30 = vpack.c.bf16 %v891_v23, %v891_v23  ;;  %v2786_v36 = vld [vmem:[%s3537_s3 + $0x270] sm:$0xff]   ;;  %v2808_v40 = vld [vmem:[%s3537_s3 + $0x208] sm:$0xff]  }
  0xeb   : > { %2583 = vmatprep.subr.bf16.mxu0 %v2762_v31  ;;  %v759_v50 = vpop.f32.mrf.mxu0  ;;  %2605 = vmatprep.subr.bf16.mxu1 %v2763_v34  ;;  %v800_v52 = vpop.f32.mrf.mxu1  ;;  %v2784_v31 = vld [vmem:[%s3537_s3 + $0x238] sm:$0xff]   ;;  %v2809_v15 = vld [vmem:[%s3537_s3 + $0x288] sm:$0xff]  }
  0xec   : > { %v894_v28 = vmax.f32 %v758_v21, 0.0  ;;  %v896_v29 = vmax.f32 %v799_v22, 0.0  ;;  %v2785_v34 = vld [vmem:[%s3537_s3 + $0x2b8] sm:$0xff]   ;;  %v2791_v50 = vld [vmem:[%s3537_s3 + $0x2e8] sm:$0xff]   ;;  %v2818_v21 = vld [vmem:[%s3537_s3 + $0x370] sm:$0xff]  }
  0xed   : > { %v760_v54 = vpop.f32.mrf.mxu0  ;;  %v801_v58 = vpop.f32.mrf.mxu1  ;;  %v2793_v52 = vld [vmem:[%s3537_s3 + $0x2a8] sm:$0xff]   ;;  %v2819_v22 = vld [vmem:[%s3537_s3 + $0x3f0] sm:$0xff]  }
  0xee   : > { %2584 = vmatpush3.bf16.msra.mxu0 %v2764_v37  ;;  %2606 = vmatpush3.bf16.msra.mxu1 %v2765_v46  ;;  %v2787_v37 = vld [vmem:[%s3537_s3 + $0x2f0] sm:$0xff]   ;;  %v910_v44 = vpack.c.bf16 %v894_v28, %v894_v28  ;;  %v912_v45 = vpack.c.bf16 %v896_v29, %v896_v29  ;;  %v2795_v54 = vld [vmem:[%s3537_s3 + $0x2e0] sm:$0xff]   ;;  %v2798_v58 = vld [vmem:[%s3537_s3 + $0x258] sm:$0xff]  }
  0xef   : > { %2585 = vmatprep.subr.bf16.mxu0 %v2766_v47  ;;  %v837_v62 = vpop.f32.mrf.mxu0  ;;  %2607 = vmatprep.subr.bf16.mxu1 %v2767_v51  ;;  %v878_v1 = vpop.f32.mrf.mxu1  ;;  %v2788_v46 = vld [vmem:[%s3537_s3 + $0x230] sm:$0xff]   ;;  %v2792_v51 = vld [vmem:[%s3537_s3 + $0x228] sm:$0xff]  }
  0xf0   : > { %v3255_v0 = vadd.f32 %v837_v62, %v364_v53  ;;  %v3259_v3 = vadd.f32 %v878_v1, %v372_v56  ;;  %v2789_v47 = vld [vmem:[%s3537_s3 + $0x2b0] sm:$0xff]   ;;  %v2794_v53 = vld [vmem:[%s3537_s3 + $0x260] sm:$0xff]   ;;  %v2801_v62 = vld [vmem:[%s3537_s3 + $0x298] sm:$0xff]  }
  0xf1   : > { %v3257_v2 = vpop.f32.mrf.mxu0  ;;  %v3265_v6 = vpop.f32.mrf.mxu1  ;;  %v2796_v56 = vld [vmem:[%s3537_s3 + $0x220] sm:$0xff]   ;;  %v2803_v1 = vld [vmem:[%s3537_s3 + $0x2d0] sm:$0xff]   ;;  %v2824_v28 = vld [vmem:[%s3537_s3 + $0x328] sm:$0xff]  }
  0xf2   : > { %2586 = vmatpush3.bf16.msra.mxu0 %v2768_v57  ;;  %2608 = vmatpush3.bf16.msra.mxu1 %v2769_v59  ;;  %v2797_v57 = vld [vmem:[%s3537_s3 + $0x2a0] sm:$0xff]   ;;  %v2799_v59 = vld [vmem:[%s3537_s3 + $0x2d8] sm:$0xff]   ;;  %v2825_v29 = vld [vmem:[%s3537_s3 + $0x3a8] sm:$0xff]  }
  0xf3   : > { %2587 = vmatprep.subr.bf16.mxu0 %v2770_v61  ;;  %v841_v11 = vpop.f32.mrf.mxu0  ;;  %2609 = vmatprep.subr.bf16.mxu1 %v2771_v63  ;;  %v882_v14 = vpop.f32.mrf.mxu1  ;;  %v2800_v61 = vld [vmem:[%s3537_s3 + $0x218] sm:$0xff]   ;;  %v2802_v63 = vld [vmem:[%s3537_s3 + $0x250] sm:$0xff]  }
  0xf4   : > { %v368_v11 = vrot.slane %v3236_v49, %v335_v55  ;;  %v756_v14 = vadd.f32 %v3215_v33, %v348_v7  ;;  %v2811_v55 = vld [vmem:[%s3537_s3 + $0x2c0] sm:$0xff]  }
  0xf5   : > { %v842_v16 = vpop.f32.mrf.mxu0  ;;  %v883_v19 = vpop.f32.mrf.mxu1  ;;  %v2812_v49 = vld [vmem:[%s3537_s3 + $0x200] sm:$0xff]  }
  0xf6   : > { %2588 = vmatpush3.bf16.msra.mxu0 %v2772_v5  ;;  %2610 = vmatpush3.bf16.msra.mxu1 %v2773_v9  ;;  %v2804_v5 = vld [vmem:[%s3537_s3 + $0x210] sm:$0xff]   ;;  %v840_v60 = vadd.f32 %v3257_v2, %v368_v11  ;;  %v893_v16 = vmax.f32 %v756_v14, 0.0  ;;  %v2815_v2 = vld [vmem:[%s3537_s3 + $0x3f8] sm:$0xff]  }
  0xf7   : > { %2589 = vmatprep.subr.bf16.mxu0 %v2774_v8  ;;  %2611 = vmatprep.subr.bf16.mxu1 %v2775_v12  ;;  %v2805_v9 = vld [vmem:[%s3537_s3 + $0x290] sm:$0xff]   ;;  %v2806_v8 = vld [vmem:[%s3537_s3 + $0x248] sm:$0xff]   ;;  %v797_v12 = vadd.f32 %v3220_v35, %v356_v4  ;;  %v881_v35 = vadd.f32 %v3265_v6, %v376_v39 }
  0xf8   : > { %v898_v6 = vmax.f32 %v840_v60, 0.0 }
  0xf9   : > { %v895_v33 = vmax.f32 %v797_v12, 0.0  ;;  %v900_v19 = vmax.f32 %v881_v35, 0.0 }
  0xfa   : > { %2590 = vmatpush3.bf16.msra.mxu0 %v2776_v18  ;;  %2612 = vmatpush3.bf16.msra.mxu1 %v2777_v42  ;;  %v2814_v18 = vld [vmem:[%s3537_s3 + $0x378] sm:$0xff]   ;;  %v914_v23 = vpack.c.bf16 %v898_v6, %v898_v6 }
  0xfb   : > { %2591 = vmatprep.subr.bf16.mxu0 %v2778_v43  ;;  %2613 = vmatprep.subr.bf16.mxu1 %v2779_v13  ;;  %v911_v20 = vpack.c.bf16 %v895_v33, %v895_v33  ;;  %v2816_v42 = vld [vmem:[%s3537_s3 + $0x338] sm:$0xff]   ;;  %v909_v43 = vpack.c.bf16 %v893_v16, %v893_v16 }
  0xfc   : > { %v2817_v13 = vld [vmem:[%s3537_s3 + $0x3b8] sm:$0xff]  }
  0xfe   : > { %2592 = vmatpush3.bf16.msra.mxu0 %v2780_v10  ;;  %2614 = vmatpush3.bf16.msra.mxu1 %v2781_v25  ;;  %v916_v10 = vpack.c.bf16 %v900_v19, %v900_v19  ;;  %v2821_v25 = vld [vmem:[%s3537_s3 + $0x3b0] sm:$0xff]  }
  0xff   : > { %2621 = vmatprep.subr.bf16.mxu0 %v2782_v26  ;;  %2643 = vmatprep.subr.bf16.mxu1 %v2783_v27  ;;  %v2822_v26 = vld [vmem:[%s3537_s3 + $0x368] sm:$0xff]  }
 0x100   : > { %v2823_v27 = vld [vmem:[%s3537_s3 + $0x3e8] sm:$0xff]  }
 0x101   : > { %2061 = vmatmul.mubr.bf16.vlgmr.msra.gmra.mxu0 %v905_v32  ;;  %2101 = vmatmul.mubr.bf16.vlgmr.msra.gmra.mxu1 %v907_v30  ;;  %v2826_v30 = vld [vmem:[%s3537_s3 + $0x360] sm:$0xff]  }
 0x102   : > { %2622 = vmatpush3.bf16.msra.mxu0 %v2784_v31  ;;  %2644 = vmatpush3.bf16.msra.mxu1 %v2785_v34  ;;  %v2827_v31 = vld [vmem:[%s3537_s3 + $0x3e0] sm:$0xff]  }
 0x103   : > { %2623 = vmatprep.subr.bf16.mxu0 %v2786_v36  ;;  %2645 = vmatprep.subr.bf16.mxu1 %v2787_v37  ;;  %v2828_v32 = vld [vmem:[%s3537_s3 + $0x320] sm:$0xff]   ;;  %v2830_v36 = vld [vmem:[%s3537_s3 + $0x358] sm:$0xff]  }
 0x104   : > { %2140 = vmatprep.mubr.bf16.mxu0 %v910_v44  ;;  %2180 = vmatprep.mubr.bf16.mxu1 %v912_v45  ;;  %v2829_v34 = vld [vmem:[%s3537_s3 + $0x3a0] sm:$0xff]   ;;  %v2831_v37 = vld [vmem:[%s3537_s3 + $0x3d8] sm:$0xff]  }
 0x105   : > { %v2832_v44 = vld [vmem:[%s3537_s3 + $0x318] sm:$0xff]  }
 0x106   : > { %2624 = vmatpush3.bf16.msra.mxu0 %v2788_v46  ;;  %2646 = vmatpush3.bf16.msra.mxu1 %v2789_v47  ;;  %v2833_v45 = vld [vmem:[%s3537_s3 + $0x398] sm:$0xff]   ;;  %v2834_v46 = vld [vmem:[%s3537_s3 + $0x350] sm:$0xff]  }
 0x107   : > { %2625 = vmatprep.subr.bf16.mxu0 %v2790_v48  ;;  %2647 = vmatprep.subr.bf16.mxu1 %v2791_v50  ;;  %v2835_v47 = vld [vmem:[%s3537_s3 + $0x3d0] sm:$0xff]  }
 0x108   : > { %v2836_v48 = vld [vmem:[%s3537_s3 + $0x310] sm:$0xff]  }
 0x109   : > { %v2837_v50 = vld [vmem:[%s3537_s3 + $0x390] sm:$0xff]  }
 0x10a   : > { %2626 = vmatpush3.bf16.msra.mxu0 %v2792_v51  ;;  %2648 = vmatpush3.bf16.msra.mxu1 %v2793_v52  ;;  %v2838_v51 = vld [vmem:[%s3537_s3 + $0x348] sm:$0xff]  }
 0x10b   : > { %2627 = vmatprep.subr.bf16.mxu0 %v2794_v53  ;;  %2649 = vmatprep.subr.bf16.mxu1 %v2795_v54  ;;  %v2839_v52 = vld [vmem:[%s3537_s3 + $0x3c8] sm:$0xff]  }
 0x10c   : > { %v2840_v53 = vld [vmem:[%s3537_s3 + $0x308] sm:$0xff]  }
 0x10d   : > { %v2841_v54 = vld [vmem:[%s3537_s3 + $0x388] sm:$0xff]  }
 0x10e   : > { %2628 = vmatpush3.bf16.msra.mxu0 %v2796_v56  ;;  %2650 = vmatpush3.bf16.msra.mxu1 %v2797_v57  ;;  %v2842_v56 = vld [vmem:[%s3537_s3 + $0x340] sm:$0xff]  }
 0x10f   : > { %2629 = vmatprep.subr.bf16.mxu0 %v2798_v58  ;;  %2651 = vmatprep.subr.bf16.mxu1 %v2799_v59  ;;  %v2843_v57 = vld [vmem:[%s3537_s3 + $0x3c0] sm:$0xff]   ;;  %v899_v58 = vmax.f32 %v3259_v3, 0.0 }
 0x110   : > { %v2844_v59 = vld [vmem:[%s3537_s3 + $0x300] sm:$0xff]  }
 0x112   : > { %2630 = vmatpush3.bf16.msra.mxu0 %v2800_v61  ;;  %2652 = vmatpush3.bf16.msra.mxu1 %v2801_v62  ;;  %v897_v61 = vmax.f32 %v3255_v0, 0.0  ;;  %v2845_v62 = vld [vmem:[%s3537_s3 + $0x380] sm:$0xff]  }
 0x113   : > { %2631 = vmatprep.subr.bf16.mxu0 %v2802_v63  ;;  %2653 = vmatprep.subr.bf16.mxu1 %v2803_v1  ;;  %v915_v63 = vpack.c.bf16 %v899_v58, %v899_v58 }
 0x114   : > { %v913_v1 = vpack.c.bf16 %v897_v61, %v897_v61 }
 0x116   : > { %2632 = vmatpush3.bf16.msra.mxu0 %v2804_v5  ;;  %2654 = vmatpush3.bf16.msra.mxu1 %v2805_v9  ;;  %v2400_v5 = vld [vmem:[%s3538_s4] ss:$0 sm:$0xff] }
 0x117   : > { %2633 = vmatprep.subr.bf16.mxu0 %v2806_v8  ;;  %2655 = vmatprep.subr.bf16.mxu1 %v2807_v41 }
 0x11a   : > { %2634 = vmatpush3.bf16.msra.mxu0 %v2808_v40  ;;  %2656 = vmatpush3.bf16.msra.mxu1 %v2809_v15 }
 0x11b   : > { %2635 = vmatprep.subr.bf16.mxu0 %v2810_v38  ;;  %2657 = vmatprep.subr.bf16.mxu1 %v2811_v55 }
 0x11e   : > { %2636 = vmatpush3.bf16.msra.mxu0 %v2812_v49  ;;  %2658 = vmatpush3.bf16.msra.mxu1 %v2813_v17 }
 0x11f   : > { %2665 = vmatprep.subr.bf16.mxu0 %v2814_v18  ;;  %2687 = vmatprep.subr.bf16.mxu1 %v2815_v2 }
 0x121   : > { %2141 = vmatmul.mubr.bf16.vlgmr.msra.gmra.mxu0 %v909_v43  ;;  %2181 = vmatmul.mubr.bf16.vlgmr.msra.gmra.mxu1 %v911_v20 }
 0x122   : > { %2666 = vmatpush3.bf16.msra.mxu0 %v2816_v42  ;;  %2688 = vmatpush3.bf16.msra.mxu1 %v2817_v13 }
 0x123   : > { %2667 = vmatprep.subr.bf16.mxu0 %v2818_v21  ;;  %2689 = vmatprep.subr.bf16.mxu1 %v2819_v22 }
 0x124   : > { %2220 = vmatprep.mubr.bf16.mxu0 %v914_v23  ;;  %2260 = vmatprep.mubr.bf16.mxu1 %v916_v10 }
 0x126   : > { %2668 = vmatpush3.bf16.msra.mxu0 %v2820_v24  ;;  %2690 = vmatpush3.bf16.msra.mxu1 %v2821_v25 }
 0x127   : > { %2669 = vmatprep.subr.bf16.mxu0 %v2822_v26  ;;  %2691 = vmatprep.subr.bf16.mxu1 %v2823_v27 }
 0x12a   : > { %2670 = vmatpush3.bf16.msra.mxu0 %v2824_v28  ;;  %2692 = vmatpush3.bf16.msra.mxu1 %v2825_v29 }
 0x12b   : > { %2671 = vmatprep.subr.bf16.mxu0 %v2826_v30  ;;  %2693 = vmatprep.subr.bf16.mxu1 %v2827_v31 }
 0x12e   : > { %2672 = vmatpush3.bf16.msra.mxu0 %v2828_v32  ;;  %2694 = vmatpush3.bf16.msra.mxu1 %v2829_v34 }
 0x12f   : > { %2673 = vmatprep.subr.bf16.mxu0 %v2830_v36  ;;  %2695 = vmatprep.subr.bf16.mxu1 %v2831_v37 }
 0x132   : > { %2674 = vmatpush3.bf16.msra.mxu0 %v2832_v44  ;;  %2696 = vmatpush3.bf16.msra.mxu1 %v2833_v45 }
 0x133   : > { %2675 = vmatprep.subr.bf16.mxu0 %v2834_v46  ;;  %2697 = vmatprep.subr.bf16.mxu1 %v2835_v47  ;;  %v2848_v47 = vld [vmem:[%s2958_s10] sm:$0xff] }
 0x136   : > { %2676 = vmatpush3.bf16.msra.mxu0 %v2836_v48  ;;  %2698 = vmatpush3.bf16.msra.mxu1 %v2837_v50 }
 0x137   : > { %2677 = vmatprep.subr.bf16.mxu0 %v2838_v51  ;;  %2699 = vmatprep.subr.bf16.mxu1 %v2839_v52 }
 0x13a   : > { %2678 = vmatpush3.bf16.msra.mxu0 %v2840_v53  ;;  %2700 = vmatpush3.bf16.msra.mxu1 %v2841_v54 }
 0x13b   : > { %2679 = vmatprep.subr.bf16.mxu0 %v2842_v56  ;;  %2701 = vmatprep.subr.bf16.mxu1 %v2843_v57 }
 0x13e   : > { %2680 = vmatpush3.bf16.msra.mxu0 %v2844_v59  ;;  %2702 = vmatpush3.bf16.msra.mxu1 %v2845_v62  ;;  %v2529_v62 = vld [vmem:[%s3539_s5] ss:$0 sm:$0xff] }
 0x141   : > { %2221 = vmatmul.mubr.bf16.vlgmr.msra.gmra.mxu0 %v913_v1  ;;  %2261 = vmatmul.mubr.bf16.vlgmr.msra.gmra.mxu1 %v915_v63  ;;  %v2530_v1 = vld [vmem:[%s3540_s6] ss:$0 sm:$0xff] }
 0x1a1   : > { %v2549_v3 = vpop.f32.mrf.mxu0  ;;  %v2571_v4 = vpop.f32.mrf.mxu1 }
 0x1a3   : > { %v2550_v0 = vpop.f32.mrf.mxu0  ;;  %v2572_v9 = vpop.f32.mrf.mxu1 }
 0x1a4   : > { %v2551_v7 = vadd.f32 %v2550_v0, %v2549_v3  ;;  %v2573_v8 = vadd.f32 %v2572_v9, %v2571_v4 }
 0x1a5   : > { %v2552_v41 = vpop.f32.mrf.mxu0  ;;  %v2574_v39 = vpop.f32.mrf.mxu1 }
 0x1a6   : > { %v1983_v11 = vadd.f32 %v2551_v7, %v2400_v5 }
 0x1a7   : > { %v2553_v12 = vpop.f32.mrf.mxu0  ;;  %v2575_v14 = vpop.f32.mrf.mxu1 }
 0x1a8   : > { %v2023_v40 = vadd.f32 %v2573_v8, %v1983_v11 }
 0x1c1   : > { %v2593_v15 = vpop.f32.mrf.mxu0  ;;  %v2615_v38 = vpop.f32.mrf.mxu1 }
 0x1c3   : > { %v2594_v55 = vpop.f32.mrf.mxu0  ;;  %v2616_v60 = vpop.f32.mrf.mxu1 }
 0x1c4   : > { %v2595_v13 = vadd.f32 %v2594_v55, %v2593_v15  ;;  %v2617_v22 = vadd.f32 %v2616_v60, %v2615_v38 }
 0x1c5   : > { %v2596_v35 = vpop.f32.mrf.mxu0  ;;  %v2618_v33 = vpop.f32.mrf.mxu1 }
 0x1c6   : > { %v2063_v21 = vadd.f32 %v2595_v13, %v2023_v40 }
 0x1c7   : > { %v2597_v49 = vpop.f32.mrf.mxu0  ;;  %v2619_v16 = vpop.f32.mrf.mxu1 }
 0x1c8   : > { %v2103_v10 = vadd.f32 %v2617_v22, %v2063_v21 }
 0x1e1   : > { %v2637_v17 = vpop.f32.mrf.mxu0  ;;  %v2659_v18 = vpop.f32.mrf.mxu1 }
 0x1e3   : > { %v2638_v2 = vpop.f32.mrf.mxu0  ;;  %v2660_v6 = vpop.f32.mrf.mxu1 }
 0x1e4   : > { %v2639_v23 = vadd.f32 %v2638_v2, %v2637_v17  ;;  %v2661_v26 = vadd.f32 %v2660_v6, %v2659_v18 }
 0x1e5   : > { %v2640_v19 = vpop.f32.mrf.mxu0  ;;  %v2662_v20 = vpop.f32.mrf.mxu1 }
 0x1e6   : > { %v2143_v24 = vadd.f32 %v2639_v23, %v2103_v10 }
 0x1e7   : > { %v2641_v42 = vpop.f32.mrf.mxu0  ;;  %v2663_v43 = vpop.f32.mrf.mxu1 }
 0x1e8   : > { %v2183_v29 = vadd.f32 %v2661_v26, %v2143_v24 }
 0x201   : > { %v2681_v25 = vpop.f32.mrf.mxu0  ;;  %v2703_v27 = vpop.f32.mrf.mxu1 }
 0x203   : > { %v2682_v28 = vpop.f32.mrf.mxu0  ;;  %v2704_v31 = vpop.f32.mrf.mxu1 }
 0x204   : > { %v2683_v30 = vadd.f32 %v2682_v28, %v2681_v25  ;;  %v2705_v36 = vadd.f32 %v2704_v31, %v2703_v27 }
 0x205   : > { %v2684_v32 = vpop.f32.mrf.mxu0  ;;  %v2706_v37 = vpop.f32.mrf.mxu1 }
 0x206   : > { %v2223_v34 = vadd.f32 %v2683_v30, %v2183_v29 }
 0x207   : > { %v2685_v44 = vpop.f32.mrf.mxu0  ;;  %v2707_v46 = vpop.f32.mrf.mxu1 }
 0x208   : > { %v2263_v45 = vadd.f32 %v2705_v36, %v2223_v34 }
 0x20a   : > { %v2268_v48 = vadd.f32 %v2848_v47, %v2263_v45 }
 0x20c   : > { %v2269_v50 = vsel %vm553_vm0, %v2268_v48, 0.0 }
 0x20d   : > { %2270 = vadd.xlane.f32.xlu0 %v2269_v50 }
 0x296   : > { %v2271_v51 = vpop.xlane.xlu0 %2270 }
 0x297   : > { %v2273_v52 = vmul.f32 0.03125, %v2271_v51 }
 0x299   : > { %v2274_v53 = vsub.f32 %v2268_v48, %v2273_v52 }
 0x29b   : > { %v2275_v54 = vmul.f32 %v2274_v53, %v2274_v53 }
 0x29d   : > { %v2276_v56 = vsel %vm553_vm0, %v2275_v54, 0.0 }
 0x29e   : > { %2277 = vadd.xlane.f32.xlu0 %v2276_v56 }
 0x327   : > { %v2278_v57 = vpop.xlane.xlu0 %2277 }
 0x328   : > { %v2279_v58 = vmul.f32 0.03125, %v2278_v57 }
 0x32a   : > { %v2280_v59 = vadd.f32 1e-05, %v2279_v58 }
 0x32c   : > { %2846 = vrsqrt.f32 %v2280_v59 }
 0x339   : > { %v2847_v61 = vpop.eup %2846 }
 0x33a   : > { %v2282_v63 = vmul.f32 %v2847_v61, %v2274_v53 }
 0x33c   : > { %v2290_v3 = vmul.f32 %v2529_v62, %v2282_v63 }
 0x33e   : > { %v2298_v4 = vadd.f32 %v2530_v1, %v2290_v3 }
 0x340   : > { %2299 = vst.msk [vmem:[%s273_s14] sm:$0xff] %vm553_vm0, %v2298_v4 }
 0x341 PF: > { %s17_s24 = sadd.s32 1, %s2855_s24  }
 0x342   : > { %p14_p4 = scmp.ge.s32.totalorder %s17_s24, 4  }
 0x344   :  { %16 = sbr.rel (!%p14_p4) target bundleno = 1 (0x1), region = 78 }

</bundles_post_ra>
